<compile_context>
chip_gen: v7x
topology: tpu7x:2x2x1
jax: 0.10.0
libtpu: 0.0.40
codegen_flags: <defaults>
</compile_context>

<pallas_src>
import functools

import numpy as np
import jax
import jax.numpy as jnp
from jax import lax
from jax.experimental import pallas as pl
from jax.experimental.pallas import tpu as pltpu


# ---------------------------------------------------------------------------
# Fused kernel: channel attention + avg/max maps + 7x7 conv + spatial gating
# ---------------------------------------------------------------------------
def make_attention_kernel(Bt, C, H, W, PAD):
    HW = H * W

    def kernel(x_ref, w1t_ref, b1_ref, w2_ref, b2_ref, hmask_ref, wc_ref, bc_ref,
               out_ref, pad_ref):
        x = x_ref[...]                                        # (Bt, C, HW) f32, lane-dense

        # ---- channel attention (squeeze-excite) ----
        pooled = jnp.mean(x, axis=2, keepdims=True)           # (Bt, C, 1)  AdaptiveAvgPool2d(1)
        h = jnp.sum(w1t_ref[...] * pooled, axis=1, keepdims=True) + b1_ref[...]   # (Bt, 1, mid)
        h = jnp.maximum(h, 0.0)                               # ReLU
        a = jnp.sum(w2_ref[...] * h, axis=2, keepdims=True) + b2_ref[...]         # (Bt, C, 1)
        out1 = x * jax.nn.sigmoid(a)                          # (Bt, C, HW) channel-gated

        # ---- per-pixel channel-mean / channel-max maps, kept lane-dense ----
        avg_map = jnp.mean(out1, axis=1)                      # (Bt, HW)
        max_map = jnp.max(out1, axis=1)                       # (Bt, HW)

        # Stage channel-gated activations now and re-read them after the conv so out1
        # does not have to stay live in vregs across the 49-tap loop.
        out_ref[...] = out1

        # ---- flat zero-bordered maps in VMEM scratch ----
        # Only the borders need (re-)zeroing: the interior is fully overwritten each step.
        # Never gate this on program_id: under "parallel" each TensorCore has its own
        # scratch instance.
        border = jnp.zeros((2 * Bt, PAD), jnp.float32)
        pad_ref[:, 0:PAD] = border
        pad_ref[:, PAD + HW:PAD + HW + PAD] = border
        # Single dense interior store: rows [0:Bt] = avg maps, rows [Bt:2Bt] = max maps.
        pad_ref[:, PAD:PAD + HW] = jnp.concatenate([avg_map, max_map], axis=0)

        # ---- 7x7 conv (padding=3) in flattened lane space, avg/max channels fused ----
        # For output pixel k = i*W + j and tap (dh, dw), the source value
        # map[:, i+dh-3, j+dw-3] lives at flat offset PAD + k + (dh-3)*W + (dw-3).
        # Vertical out-of-bounds taps read the zero borders; horizontal wrap-around is
        # killed by the precomputed per-dw column mask (applied once per dw).
        acc = None
        for dw in range(7):
            part = None
            for dh in range(7):
                t = dh * 7 + dw
                start = PAD + (dh - 3) * W + (dw - 3)
                term = pad_ref[:, start:start + HW] * wc_ref[:, t:t + 1]   # (2Bt, HW)
                part = term if part is None else part + term
            masked = part * hmask_ref[dw:dw + 1, :]
            acc = masked if acc is None else acc + masked

        conv = acc[0:Bt, :] + acc[Bt:2 * Bt, :] + bc_ref[0]   # (Bt, HW): avg-ch + max-ch + bias
        s = jax.nn.sigmoid(conv)                              # (Bt, HW)

        # ---- spatial gating, lane-dense full-block store ----
        out_ref[...] = out_ref[...] * s[:, None, :]           # (Bt, C, HW)

    return kernel


# ---------------------------------------------------------------------------
# Wrapper
# ---------------------------------------------------------------------------
@functools.lru_cache(maxsize=None)
def _hmask_np(H, W):
    # hmask[dw, k] = 1 iff 0 <= (k % W) + dw - 3 < W  (kills horizontal wrap-around).
    HW = H * W
    col = np.arange(HW) % W
    return np.stack(
        [((col >= 3 - dw) & (col < W + 3 - dw)).astype(np.float32) for dw in range(7)],
        axis=0)                                               # (7, HW)


def _pick_block_b(B):
    # Largest divisor of B that keeps >= 2 grid steps (both v7x TensorCores fed) while
    # amortizing per-step grid overhead on single-TC v5e/v6e; capped to bound vreg/VMEM use.
    target = min(8, max(1, B // 2))
    for bt in range(target, 0, -1):
        if B % bt == 0:
            return bt
    return 1


def attention_forward(x, params, block_b=None):
    B, C, H, W = x.shape
    HW = H * W
    mid = params["w1"].shape[0]
    assert C % 8 == 0 and HW % 128 == 0, (
        "attention_forward expects C % 8 == 0 and H*W % 128 == 0 "
        "(pad inputs in the caller otherwise)")

    Bt = _pick_block_b(B) if block_b is None else block_b
    assert B % Bt == 0

    # Image starts PAD lanes into the flat scratch row; PAD is 128-aligned and >= 3*W + 3.
    PAD = max(128, ((3 * W + 3 + 127) // 128) * 128)
    SCR = 2 * PAD + HW

    x2 = x.reshape(B, C, HW).astype(jnp.float32)
    w1t = jnp.transpose(params["w1"]).astype(jnp.float32)     # (C, mid)
    b1 = params["b1"].reshape(1, mid).astype(jnp.float32)
    b1 = b1[None]                                             # (1, 1, mid) for (Bt,1,mid) add
    w2 = params["w2"].astype(jnp.float32)                     # (C, mid)
    b2 = params["b2"].reshape(C, 1).astype(jnp.float32)
    # Conv weights as a (2*Bt, 49) VMEM table: rows [0:Bt] = avg-channel weights,
    # rows [Bt:2Bt] = max-channel weights (matches the scratch row layout).
    wc_rep = jnp.repeat(params["wc"].reshape(2, 49).astype(jnp.float32), Bt, axis=0)
    bc = params["bc"].reshape(1).astype(jnp.float32)          # (1,) -> SMEM scalar

    hmask = jnp.asarray(_hmask_np(H, W))                      # (7, HW), constant under jit

    out = pl.pallas_call(
        make_attention_kernel(Bt, C, H, W, PAD),
        out_shape=jax.ShapeDtypeStruct((B, C, HW), jnp.float32),
        grid=(B // Bt,),
        in_specs=[
            pl.BlockSpec((Bt, C, HW), lambda b: (b, 0, 0)),
            pl.BlockSpec((C, mid), lambda b: (0, 0)),
            pl.BlockSpec((1, 1, mid), lambda b: (0, 0, 0)),
            pl.BlockSpec((C, mid), lambda b: (0, 0)),
            pl.BlockSpec((C, 1), lambda b: (0, 0)),
            pl.BlockSpec((7, HW), lambda b: (0, 0)),
            pl.BlockSpec((2 * Bt, 49), lambda b: (0, 0)),
            pl.BlockSpec(memory_space=pltpu.MemorySpace.SMEM),
        ],
        out_specs=pl.BlockSpec((Bt, C, HW), lambda b: (b, 0, 0)),
        scratch_shapes=[pltpu.VMEM((2 * Bt, SCR), jnp.float32)],
        compiler_params=pltpu.CompilerParams(dimension_semantics=("parallel",)),
    )(x2, w1t, b1, w2, b2, hmask, wc_rep, bc)
    return out.reshape(B, C, H, W)


# ---------------------------------------------------------------------------
# Pure-JAX reference (mirrors the PyTorch module exactly)
# ---------------------------------------------------------------------------
def attention_reference(x, params):
    w1, b1, w2, b2 = params["w1"], params["b1"], params["w2"], params["b2"]
    wc, bc = params["wc"], params["bc"]
    pooled = jnp.mean(x, axis=(2, 3), keepdims=True)                     # (B,C,1,1)
    h = jnp.einsum('mc,bcij->bmij', w1, pooled) + b1[None, :, None, None]
    h = jnp.maximum(h, 0.0)
    att = jax.nn.sigmoid(jnp.einsum('cm,bmij->bcij', w2, h) + b2[None, :, None, None])
    out1 = x * att
    avg = jnp.mean(out1, axis=1, keepdims=True)
    mx = jnp.max(out1, axis=1, keepdims=True)
    cat = jnp.concatenate([avg, mx], axis=1)                              # (B,2,H,W)
    conv = lax.conv_general_dilated(
        cat, wc.reshape(1, 2, 7, 7), window_strides=(1, 1),
        padding=[(3, 3), (3, 3)], dimension_numbers=('NCHW', 'OIHW', 'NCHW')) + bc
    return out1 * jax.nn.sigmoid(conv)


if __name__ == "__main__":
    B, C, H, W = 2, 32, 16, 16
    reduction = 16
    mid = C // reduction

    key = jax.random.PRNGKey(0)
    ks = jax.random.split(key, 7)
    params = {
        "w1": jax.random.normal(ks[0], (mid, C), jnp.float32) * 0.2,   # fc1 weight (1x1 conv)
        "b1": jax.random.normal(ks[1], (mid,), jnp.float32) * 0.1,
        "w2": jax.random.normal(ks[2], (C, mid), jnp.float32) * 0.2,   # fc2 weight (1x1 conv)
        "b2": jax.random.normal(ks[3], (C,), jnp.float32) * 0.1,
        "wc": jax.random.normal(ks[4], (2, 7, 7), jnp.float32) * 0.1,  # spatial 7x7 conv weight
        "bc": jax.random.normal(ks[5], (), jnp.float32) * 0.1,         # spatial conv bias
    }
    x = jax.random.normal(ks[6], (B, C, H, W), jnp.float32)

    fwd = jax.jit(attention_forward)
    out = jax.block_until_ready(fwd(x, params))
    ref = jax.block_until_ready(attention_reference(x, params))
    np.testing.assert_allclose(np.asarray(out), np.asarray(ref), rtol=1e-4, atol=1e-4)

    print("KERNEL_OK")
</pallas_src>

<mosaic_0001>
module attributes {stable_mosaic.version = 11 : i64} {
  func.func @kernel(%arg0: i32, %arg1: memref<1x32x256xf32, #tpu.memory_space<vmem>>, %arg2: memref<32x2xf32, #tpu.memory_space<vmem>>, %arg3: memref<1x1x2xf32, #tpu.memory_space<vmem>>, %arg4: memref<32x2xf32, #tpu.memory_space<vmem>>, %arg5: memref<32x1xf32, #tpu.memory_space<vmem>>, %arg6: memref<7x256xf32, #tpu.memory_space<vmem>>, %arg7: memref<2x49xf32, #tpu.memory_space<vmem>>, %arg8: memref<1xf32, #tpu.memory_space<smem>>, %arg9: memref<1x32x256xf32, #tpu.memory_space<vmem>>, %arg10: memref<2x512xf32, #tpu.memory_space<vmem>>) attributes {dimension_semantics = [#tpu.dimension_semantics<parallel>], iteration_bounds = array<i64: 2>, scalar_prefetch = 0 : i64, scratch_operands = 1 : i64, tpu.core_type = #tpu.core_type<tc>, window_params = [{transform_indices = @transform_0, window_bounds = array<i64: 1, 32, 256>}, {pipeline_mode = #tpu.pipeline_mode<synchronous>, transform_indices = @transform_1, window_bounds = array<i64: 32, 2>}, {pipeline_mode = #tpu.pipeline_mode<synchronous>, transform_indices = @transform_2, window_bounds = array<i64: 1, 1, 2>}, {pipeline_mode = #tpu.pipeline_mode<synchronous>, transform_indices = @transform_3, window_bounds = array<i64: 32, 2>}, {pipeline_mode = #tpu.pipeline_mode<synchronous>, transform_indices = @transform_4, window_bounds = array<i64: 32, 1>}, {pipeline_mode = #tpu.pipeline_mode<synchronous>, transform_indices = @transform_5, window_bounds = array<i64: 7, 256>}, {pipeline_mode = #tpu.pipeline_mode<synchronous>, transform_indices = @transform_6, window_bounds = array<i64: 2, 49>}, {transform_indices = @transform_7, window_bounds = array<i64: 1>}, {transform_indices = @transform_8, window_bounds = array<i64: 1, 32, 256>}]} {
    %c0 = arith.constant 0 : index
    %c0_0 = arith.constant 0 : index
    %c0_1 = arith.constant 0 : index
    %0 = vector.load %arg1[%c0, %c0_0, %c0_1] : memref<1x32x256xf32, #tpu.memory_space<vmem>>, vector<1x32x256xf32>
    %cst = arith.constant dense<0.000000e+00> : vector<1x32xf32>
    %1 = vector.multi_reduction <add>, %0, %cst [2] : vector<1x32x256xf32> to vector<1x32xf32>
    %2 = vector.shape_cast %1 : vector<1x32xf32> to vector<1x32x1xf32>
    %cst_2 = arith.constant 2.560000e+02 : f32
    %3 = vector.broadcast %cst_2 : f32 to vector<1x32x1xf32>
    %4 = arith.divf %2, %3 : vector<1x32x1xf32>
    %c0_3 = arith.constant 0 : index
    %c0_4 = arith.constant 0 : index
    %5 = vector.load %arg2[%c0_3, %c0_4] : memref<32x2xf32, #tpu.memory_space<vmem>>, vector<32x2xf32>
    %6 = vector.shape_cast %5 : vector<32x2xf32> to vector<1x32x2xf32>
    %7 = vector.broadcast %4 : vector<1x32x1xf32> to vector<1x32x2xf32>
    %8 = arith.mulf %6, %7 : vector<1x32x2xf32>
    %cst_5 = arith.constant dense<0.000000e+00> : vector<1x2xf32>
    %9 = vector.multi_reduction <add>, %8, %cst_5 [1] : vector<1x32x2xf32> to vector<1x2xf32>
    %10 = vector.shape_cast %9 : vector<1x2xf32> to vector<1x1x2xf32>
    %c0_6 = arith.constant 0 : index
    %c0_7 = arith.constant 0 : index
    %c0_8 = arith.constant 0 : index
    %11 = vector.load %arg3[%c0_6, %c0_7, %c0_8] : memref<1x1x2xf32, #tpu.memory_space<vmem>>, vector<1x1x2xf32>
    %12 = arith.addf %10, %11 : vector<1x1x2xf32>
    %cst_9 = arith.constant 0.000000e+00 : f32
    %13 = vector.broadcast %cst_9 : f32 to vector<1x1x2xf32>
    %14 = arith.maximumf %12, %13 : vector<1x1x2xf32>
    %c0_10 = arith.constant 0 : index
    %c0_11 = arith.constant 0 : index
    %15 = vector.load %arg4[%c0_10, %c0_11] : memref<32x2xf32, #tpu.memory_space<vmem>>, vector<32x2xf32>
    %16 = vector.shape_cast %15 : vector<32x2xf32> to vector<1x32x2xf32>
    %17 = vector.broadcast %14 : vector<1x1x2xf32> to vector<1x32x2xf32>
    %18 = arith.mulf %16, %17 : vector<1x32x2xf32>
    %cst_12 = arith.constant dense<0.000000e+00> : vector<1x32xf32>
    %19 = vector.multi_reduction <add>, %18, %cst_12 [2] : vector<1x32x2xf32> to vector<1x32xf32>
    %20 = vector.shape_cast %19 : vector<1x32xf32> to vector<1x32x1xf32>
    %c0_13 = arith.constant 0 : index
    %c0_14 = arith.constant 0 : index
    %21 = vector.load %arg5[%c0_13, %c0_14] : memref<32x1xf32, #tpu.memory_space<vmem>>, vector<32x1xf32>
    %22 = vector.shape_cast %21 : vector<32x1xf32> to vector<1x32x1xf32>
    %23 = arith.addf %20, %22 : vector<1x32x1xf32>
    %24 = arith.negf %23 : vector<1x32x1xf32>
    %25 = math.exp %24 : vector<1x32x1xf32>
    %cst_15 = arith.constant 1.000000e+00 : f32
    %26 = vector.broadcast %cst_15 : f32 to vector<1x32x1xf32>
    %27 = arith.addf %26, %25 : vector<1x32x1xf32>
    %28 = arith.divf %26, %27 : vector<1x32x1xf32>
    %29 = vector.broadcast %28 : vector<1x32x1xf32> to vector<1x32x256xf32>
    %30 = arith.mulf %0, %29 : vector<1x32x256xf32>
    %cst_16 = arith.constant dense<0.000000e+00> : vector<1x256xf32>
    %31 = vector.multi_reduction <add>, %30, %cst_16 [1] : vector<1x32x256xf32> to vector<1x256xf32>
    %cst_17 = arith.constant 3.200000e+01 : f32
    %32 = vector.broadcast %cst_17 : f32 to vector<1x256xf32>
    %33 = arith.divf %31, %32 : vector<1x256xf32>
    %cst_18 = arith.constant dense<0xFF800000> : vector<1x256xf32>
    %34 = vector.multi_reduction <maximumf>, %30, %cst_18 [1] : vector<1x32x256xf32> to vector<1x256xf32>
    %c0_19 = arith.constant 0 : index
    %c0_20 = arith.constant 0 : index
    %c0_21 = arith.constant 0 : index
    %35 = vector.load %arg9[%c0_19, %c0_20, %c0_21] : memref<1x32x256xf32, #tpu.memory_space<vmem>>, vector<1x32x256xf32>
    tpu.vector_store %arg9[%c0_19, %c0_20, %c0_21], %30 {strides = array<i32>} : memref<1x32x256xf32, #tpu.memory_space<vmem>>, vector<1x32x256xf32>,
    %cst_22 = arith.constant 0.000000e+00 : f32
    %36 = vector.broadcast %cst_22 : f32 to vector<2x128xf32>
    %c0_23 = arith.constant 0 : index
    %c0_24 = arith.constant 0 : index
    %37 = vector.load %arg10[%c0_23, %c0_24] : memref<2x512xf32, #tpu.memory_space<vmem>>, vector<2x128xf32>
    tpu.vector_store %arg10[%c0_23, %c0_24], %36 {strides = array<i32>} : memref<2x512xf32, #tpu.memory_space<vmem>>, vector<2x128xf32>,
    %c0_25 = arith.constant 0 : index
    %c384 = arith.constant 384 : index
    %38 = vector.load %arg10[%c0_25, %c384] : memref<2x512xf32, #tpu.memory_space<vmem>>, vector<2x128xf32>
    tpu.vector_store %arg10[%c0_25, %c384], %36 {strides = array<i32>} : memref<2x512xf32, #tpu.memory_space<vmem>>, vector<2x128xf32>,
    %39 = tpu.concatenate %33, %34 in 0 : vector<1x256xf32>, vector<1x256xf32> -> vector<2x256xf32>
    %c0_26 = arith.constant 0 : index
    %c128 = arith.constant 128 : index
    %40 = vector.load %arg10[%c0_26, %c128] : memref<2x512xf32, #tpu.memory_space<vmem>>, vector<2x256xf32>
    tpu.vector_store %arg10[%c0_26, %c128], %39 {strides = array<i32>} : memref<2x512xf32, #tpu.memory_space<vmem>>, vector<2x256xf32>,
    %c0_27 = arith.constant 0 : index
    %c77 = arith.constant 77 : index
    %41 = vector.load %arg10[%c0_27, %c77] : memref<2x512xf32, #tpu.memory_space<vmem>>, vector<2x256xf32>
    %c0_28 = arith.constant 0 : index
    %c0_29 = arith.constant 0 : index
    %42 = vector.load %arg7[%c0_28, %c0_29] : memref<2x49xf32, #tpu.memory_space<vmem>>, vector<2x1xf32>
    %43 = vector.broadcast %42 : vector<2x1xf32> to vector<2x256xf32>
    %44 = arith.mulf %41, %43 : vector<2x256xf32>
    %c0_30 = arith.constant 0 : index
    %c93 = arith.constant 93 : index
    %45 = vector.load %arg10[%c0_30, %c93] : memref<2x512xf32, #tpu.memory_space<vmem>>, vector<2x256xf32>
    %c0_31 = arith.constant 0 : index
    %c7 = arith.constant 7 : index
    %46 = vector.load %arg7[%c0_31, %c7] : memref<2x49xf32, #tpu.memory_space<vmem>>, vector<2x1xf32>
    %47 = vector.broadcast %46 : vector<2x1xf32> to vector<2x256xf32>
    %48 = arith.mulf %45, %47 : vector<2x256xf32>
    %49 = arith.addf %44, %48 : vector<2x256xf32>
    %c0_32 = arith.constant 0 : index
    %c109 = arith.constant 109 : index
    %50 = vector.load %arg10[%c0_32, %c109] : memref<2x512xf32, #tpu.memory_space<vmem>>, vector<2x256xf32>
    %c0_33 = arith.constant 0 : index
    %c14 = arith.constant 14 : index
    %51 = vector.load %arg7[%c0_33, %c14] : memref<2x49xf32, #tpu.memory_space<vmem>>, vector<2x1xf32>
    %52 = vector.broadcast %51 : vector<2x1xf32> to vector<2x256xf32>
    %53 = arith.mulf %50, %52 : vector<2x256xf32>
    %54 = arith.addf %49, %53 : vector<2x256xf32>
    %c0_34 = arith.constant 0 : index
    %c125 = arith.constant 125 : index
    %55 = vector.load %arg10[%c0_34, %c125] : memref<2x512xf32, #tpu.memory_space<vmem>>, vector<2x256xf32>
    %c0_35 = arith.constant 0 : index
    %c21 = arith.constant 21 : index
    %56 = vector.load %arg7[%c0_35, %c21] : memref<2x49xf32, #tpu.memory_space<vmem>>, vector<2x1xf32>
    %57 = vector.broadcast %56 : vector<2x1xf32> to vector<2x256xf32>
    %58 = arith.mulf %55, %57 : vector<2x256xf32>
    %59 = arith.addf %54, %58 : vector<2x256xf32>
    %c0_36 = arith.constant 0 : index
    %c141 = arith.constant 141 : index
    %60 = vector.load %arg10[%c0_36, %c141] : memref<2x512xf32, #tpu.memory_space<vmem>>, vector<2x256xf32>
    %c0_37 = arith.constant 0 : index
    %c28 = arith.constant 28 : index
    %61 = vector.load %arg7[%c0_37, %c28] : memref<2x49xf32, #tpu.memory_space<vmem>>, vector<2x1xf32>
    %62 = vector.broadcast %61 : vector<2x1xf32> to vector<2x256xf32>
    %63 = arith.mulf %60, %62 : vector<2x256xf32>
    %64 = arith.addf %59, %63 : vector<2x256xf32>
    %c0_38 = arith.constant 0 : index
    %c157 = arith.constant 157 : index
    %65 = vector.load %arg10[%c0_38, %c157] : memref<2x512xf32, #tpu.memory_space<vmem>>, vector<2x256xf32>
    %c0_39 = arith.constant 0 : index
    %c35 = arith.constant 35 : index
    %66 = vector.load %arg7[%c0_39, %c35] : memref<2x49xf32, #tpu.memory_space<vmem>>, vector<2x1xf32>
    %67 = vector.broadcast %66 : vector<2x1xf32> to vector<2x256xf32>
    %68 = arith.mulf %65, %67 : vector<2x256xf32>
    %69 = arith.addf %64, %68 : vector<2x256xf32>
    %c0_40 = arith.constant 0 : index
    %c173 = arith.constant 173 : index
    %70 = vector.load %arg10[%c0_40, %c173] : memref<2x512xf32, #tpu.memory_space<vmem>>, vector<2x256xf32>
    %c0_41 = arith.constant 0 : index
    %c42 = arith.constant 42 : index
    %71 = vector.load %arg7[%c0_41, %c42] : memref<2x49xf32, #tpu.memory_space<vmem>>, vector<2x1xf32>
    %72 = vector.broadcast %71 : vector<2x1xf32> to vector<2x256xf32>
    %73 = arith.mulf %70, %72 : vector<2x256xf32>
    %74 = arith.addf %69, %73 : vector<2x256xf32>
    %c0_42 = arith.constant 0 : index
    %c0_43 = arith.constant 0 : index
    %75 = vector.load %arg6[%c0_42, %c0_43] : memref<7x256xf32, #tpu.memory_space<vmem>>, vector<1x256xf32>
    %76 = vector.broadcast %75 : vector<1x256xf32> to vector<2x256xf32>
    %77 = arith.mulf %74, %76 : vector<2x256xf32>
    %c0_44 = arith.constant 0 : index
    %c78 = arith.constant 78 : index
    %78 = vector.load %arg10[%c0_44, %c78] : memref<2x512xf32, #tpu.memory_space<vmem>>, vector<2x256xf32>
    %c0_45 = arith.constant 0 : index
    %c1 = arith.constant 1 : index
    %79 = vector.load %arg7[%c0_45, %c1] : memref<2x49xf32, #tpu.memory_space<vmem>>, vector<2x1xf32>
    %80 = vector.broadcast %79 : vector<2x1xf32> to vector<2x256xf32>
    %81 = arith.mulf %78, %80 : vector<2x256xf32>
    %c0_46 = arith.constant 0 : index
    %c94 = arith.constant 94 : index
    %82 = vector.load %arg10[%c0_46, %c94] : memref<2x512xf32, #tpu.memory_space<vmem>>, vector<2x256xf32>
    %c0_47 = arith.constant 0 : index
    %c8 = arith.constant 8 : index
    %83 = vector.load %arg7[%c0_47, %c8] : memref<2x49xf32, #tpu.memory_space<vmem>>, vector<2x1xf32>
    %84 = vector.broadcast %83 : vector<2x1xf32> to vector<2x256xf32>
    %85 = arith.mulf %82, %84 : vector<2x256xf32>
    %86 = arith.addf %81, %85 : vector<2x256xf32>
    %c0_48 = arith.constant 0 : index
    %c110 = arith.constant 110 : index
    %87 = vector.load %arg10[%c0_48, %c110] : memref<2x512xf32, #tpu.memory_space<vmem>>, vector<2x256xf32>
    %c0_49 = arith.constant 0 : index
    %c15 = arith.constant 15 : index
    %88 = vector.load %arg7[%c0_49, %c15] : memref<2x49xf32, #tpu.memory_space<vmem>>, vector<2x1xf32>
    %89 = vector.broadcast %88 : vector<2x1xf32> to vector<2x256xf32>
    %90 = arith.mulf %87, %89 : vector<2x256xf32>
    %91 = arith.addf %86, %90 : vector<2x256xf32>
    %c0_50 = arith.constant 0 : index
    %c126 = arith.constant 126 : index
    %92 = vector.load %arg10[%c0_50, %c126] : memref<2x512xf32, #tpu.memory_space<vmem>>, vector<2x256xf32>
    %c0_51 = arith.constant 0 : index
    %c22 = arith.constant 22 : index
    %93 = vector.load %arg7[%c0_51, %c22] : memref<2x49xf32, #tpu.memory_space<vmem>>, vector<2x1xf32>
    %94 = vector.broadcast %93 : vector<2x1xf32> to vector<2x256xf32>
    %95 = arith.mulf %92, %94 : vector<2x256xf32>
    %96 = arith.addf %91, %95 : vector<2x256xf32>
    %c0_52 = arith.constant 0 : index
    %c142 = arith.constant 142 : index
    %97 = vector.load %arg10[%c0_52, %c142] : memref<2x512xf32, #tpu.memory_space<vmem>>, vector<2x256xf32>
    %c0_53 = arith.constant 0 : index
    %c29 = arith.constant 29 : index
    %98 = vector.load %arg7[%c0_53, %c29] : memref<2x49xf32, #tpu.memory_space<vmem>>, vector<2x1xf32>
    %99 = vector.broadcast %98 : vector<2x1xf32> to vector<2x256xf32>
    %100 = arith.mulf %97, %99 : vector<2x256xf32>
    %101 = arith.addf %96, %100 : vector<2x256xf32>
    %c0_54 = arith.constant 0 : index
    %c158 = arith.constant 158 : index
    %102 = vector.load %arg10[%c0_54, %c158] : memref<2x512xf32, #tpu.memory_space<vmem>>, vector<2x256xf32>
    %c0_55 = arith.constant 0 : index
    %c36 = arith.constant 36 : index
    %103 = vector.load %arg7[%c0_55, %c36] : memref<2x49xf32, #tpu.memory_space<vmem>>, vector<2x1xf32>
    %104 = vector.broadcast %103 : vector<2x1xf32> to vector<2x256xf32>
    %105 = arith.mulf %102, %104 : vector<2x256xf32>
    %106 = arith.addf %101, %105 : vector<2x256xf32>
    %c0_56 = arith.constant 0 : index
    %c174 = arith.constant 174 : index
    %107 = vector.load %arg10[%c0_56, %c174] : memref<2x512xf32, #tpu.memory_space<vmem>>, vector<2x256xf32>
    %c0_57 = arith.constant 0 : index
    %c43 = arith.constant 43 : index
    %108 = vector.load %arg7[%c0_57, %c43] : memref<2x49xf32, #tpu.memory_space<vmem>>, vector<2x1xf32>
    %109 = vector.broadcast %108 : vector<2x1xf32> to vector<2x256xf32>
    %110 = arith.mulf %107, %109 : vector<2x256xf32>
    %111 = arith.addf %106, %110 : vector<2x256xf32>
    %c1_58 = arith.constant 1 : index
    %c0_59 = arith.constant 0 : index
    %112 = vector.load %arg6[%c1_58, %c0_59] : memref<7x256xf32, #tpu.memory_space<vmem>>, vector<1x256xf32>
    %113 = vector.broadcast %112 : vector<1x256xf32> to vector<2x256xf32>
    %114 = arith.mulf %111, %113 : vector<2x256xf32>
    %115 = arith.addf %77, %114 : vector<2x256xf32>
    %c0_60 = arith.constant 0 : index
    %c79 = arith.constant 79 : index
    %116 = vector.load %arg10[%c0_60, %c79] : memref<2x512xf32, #tpu.memory_space<vmem>>, vector<2x256xf32>
    %c0_61 = arith.constant 0 : index
    %c2 = arith.constant 2 : index
    %117 = vector.load %arg7[%c0_61, %c2] : memref<2x49xf32, #tpu.memory_space<vmem>>, vector<2x1xf32>
    %118 = vector.broadcast %117 : vector<2x1xf32> to vector<2x256xf32>
    %119 = arith.mulf %116, %118 : vector<2x256xf32>
    %c0_62 = arith.constant 0 : index
    %c95 = arith.constant 95 : index
    %120 = vector.load %arg10[%c0_62, %c95] : memref<2x512xf32, #tpu.memory_space<vmem>>, vector<2x256xf32>
    %c0_63 = arith.constant 0 : index
    %c9 = arith.constant 9 : index
    %121 = vector.load %arg7[%c0_63, %c9] : memref<2x49xf32, #tpu.memory_space<vmem>>, vector<2x1xf32>
    %122 = vector.broadcast %121 : vector<2x1xf32> to vector<2x256xf32>
    %123 = arith.mulf %120, %122 : vector<2x256xf32>
    %124 = arith.addf %119, %123 : vector<2x256xf32>
    %c0_64 = arith.constant 0 : index
    %c111 = arith.constant 111 : index
    %125 = vector.load %arg10[%c0_64, %c111] : memref<2x512xf32, #tpu.memory_space<vmem>>, vector<2x256xf32>
    %c0_65 = arith.constant 0 : index
    %c16 = arith.constant 16 : index
    %126 = vector.load %arg7[%c0_65, %c16] : memref<2x49xf32, #tpu.memory_space<vmem>>, vector<2x1xf32>
    %127 = vector.broadcast %126 : vector<2x1xf32> to vector<2x256xf32>
    %128 = arith.mulf %125, %127 : vector<2x256xf32>
    %129 = arith.addf %124, %128 : vector<2x256xf32>
    %c0_66 = arith.constant 0 : index
    %c127 = arith.constant 127 : index
    %130 = vector.load %arg10[%c0_66, %c127] : memref<2x512xf32, #tpu.memory_space<vmem>>, vector<2x256xf32>
    %c0_67 = arith.constant 0 : index
    %c23 = arith.constant 23 : index
    %131 = vector.load %arg7[%c0_67, %c23] : memref<2x49xf32, #tpu.memory_space<vmem>>, vector<2x1xf32>
    %132 = vector.broadcast %131 : vector<2x1xf32> to vector<2x256xf32>
    %133 = arith.mulf %130, %132 : vector<2x256xf32>
    %134 = arith.addf %129, %133 : vector<2x256xf32>
    %c0_68 = arith.constant 0 : index
    %c143 = arith.constant 143 : index
    %135 = vector.load %arg10[%c0_68, %c143] : memref<2x512xf32, #tpu.memory_space<vmem>>, vector<2x256xf32>
    %c0_69 = arith.constant 0 : index
    %c30 = arith.constant 30 : index
    %136 = vector.load %arg7[%c0_69, %c30] : memref<2x49xf32, #tpu.memory_space<vmem>>, vector<2x1xf32>
    %137 = vector.broadcast %136 : vector<2x1xf32> to vector<2x256xf32>
    %138 = arith.mulf %135, %137 : vector<2x256xf32>
    %139 = arith.addf %134, %138 : vector<2x256xf32>
    %c0_70 = arith.constant 0 : index
    %c159 = arith.constant 159 : index
    %140 = vector.load %arg10[%c0_70, %c159] : memref<2x512xf32, #tpu.memory_space<vmem>>, vector<2x256xf32>
    %c0_71 = arith.constant 0 : index
    %c37 = arith.constant 37 : index
    %141 = vector.load %arg7[%c0_71, %c37] : memref<2x49xf32, #tpu.memory_space<vmem>>, vector<2x1xf32>
    %142 = vector.broadcast %141 : vector<2x1xf32> to vector<2x256xf32>
    %143 = arith.mulf %140, %142 : vector<2x256xf32>
    %144 = arith.addf %139, %143 : vector<2x256xf32>
    %c0_72 = arith.constant 0 : index
    %c175 = arith.constant 175 : index
    %145 = vector.load %arg10[%c0_72, %c175] : memref<2x512xf32, #tpu.memory_space<vmem>>, vector<2x256xf32>
    %c0_73 = arith.constant 0 : index
    %c44 = arith.constant 44 : index
    %146 = vector.load %arg7[%c0_73, %c44] : memref<2x49xf32, #tpu.memory_space<vmem>>, vector<2x1xf32>
    %147 = vector.broadcast %146 : vector<2x1xf32> to vector<2x256xf32>
    %148 = arith.mulf %145, %147 : vector<2x256xf32>
    %149 = arith.addf %144, %148 : vector<2x256xf32>
    %c2_74 = arith.constant 2 : index
    %c0_75 = arith.constant 0 : index
    %150 = vector.load %arg6[%c2_74, %c0_75] : memref<7x256xf32, #tpu.memory_space<vmem>>, vector<1x256xf32>
    %151 = vector.broadcast %150 : vector<1x256xf32> to vector<2x256xf32>
    %152 = arith.mulf %149, %151 : vector<2x256xf32>
    %153 = arith.addf %115, %152 : vector<2x256xf32>
    %c0_76 = arith.constant 0 : index
    %c80 = arith.constant 80 : index
    %154 = vector.load %arg10[%c0_76, %c80] : memref<2x512xf32, #tpu.memory_space<vmem>>, vector<2x256xf32>
    %c0_77 = arith.constant 0 : index
    %c3 = arith.constant 3 : index
    %155 = vector.load %arg7[%c0_77, %c3] : memref<2x49xf32, #tpu.memory_space<vmem>>, vector<2x1xf32>
    %156 = vector.broadcast %155 : vector<2x1xf32> to vector<2x256xf32>
    %157 = arith.mulf %154, %156 : vector<2x256xf32>
    %c0_78 = arith.constant 0 : index
    %c96 = arith.constant 96 : index
    %158 = vector.load %arg10[%c0_78, %c96] : memref<2x512xf32, #tpu.memory_space<vmem>>, vector<2x256xf32>
    %c0_79 = arith.constant 0 : index
    %c10 = arith.constant 10 : index
    %159 = vector.load %arg7[%c0_79, %c10] : memref<2x49xf32, #tpu.memory_space<vmem>>, vector<2x1xf32>
    %160 = vector.broadcast %159 : vector<2x1xf32> to vector<2x256xf32>
    %161 = arith.mulf %158, %160 : vector<2x256xf32>
    %162 = arith.addf %157, %161 : vector<2x256xf32>
    %c0_80 = arith.constant 0 : index
    %c112 = arith.constant 112 : index
    %163 = vector.load %arg10[%c0_80, %c112] : memref<2x512xf32, #tpu.memory_space<vmem>>, vector<2x256xf32>
    %c0_81 = arith.constant 0 : index
    %c17 = arith.constant 17 : index
    %164 = vector.load %arg7[%c0_81, %c17] : memref<2x49xf32, #tpu.memory_space<vmem>>, vector<2x1xf32>
    %165 = vector.broadcast %164 : vector<2x1xf32> to vector<2x256xf32>
    %166 = arith.mulf %163, %165 : vector<2x256xf32>
    %167 = arith.addf %162, %166 : vector<2x256xf32>
    %c0_82 = arith.constant 0 : index
    %c128_83 = arith.constant 128 : index
    %168 = vector.load %arg10[%c0_82, %c128_83] : memref<2x512xf32, #tpu.memory_space<vmem>>, vector<2x256xf32>
    %c0_84 = arith.constant 0 : index
    %c24 = arith.constant 24 : index
    %169 = vector.load %arg7[%c0_84, %c24] : memref<2x49xf32, #tpu.memory_space<vmem>>, vector<2x1xf32>
    %170 = vector.broadcast %169 : vector<2x1xf32> to vector<2x256xf32>
    %171 = arith.mulf %168, %170 : vector<2x256xf32>
    %172 = arith.addf %167, %171 : vector<2x256xf32>
    %c0_85 = arith.constant 0 : index
    %c144 = arith.constant 144 : index
    %173 = vector.load %arg10[%c0_85, %c144] : memref<2x512xf32, #tpu.memory_space<vmem>>, vector<2x256xf32>
    %c0_86 = arith.constant 0 : index
    %c31 = arith.constant 31 : index
    %174 = vector.load %arg7[%c0_86, %c31] : memref<2x49xf32, #tpu.memory_space<vmem>>, vector<2x1xf32>
    %175 = vector.broadcast %174 : vector<2x1xf32> to vector<2x256xf32>
    %176 = arith.mulf %173, %175 : vector<2x256xf32>
    %177 = arith.addf %172, %176 : vector<2x256xf32>
    %c0_87 = arith.constant 0 : index
    %c160 = arith.constant 160 : index
    %178 = vector.load %arg10[%c0_87, %c160] : memref<2x512xf32, #tpu.memory_space<vmem>>, vector<2x256xf32>
    %c0_88 = arith.constant 0 : index
    %c38 = arith.constant 38 : index
    %179 = vector.load %arg7[%c0_88, %c38] : memref<2x49xf32, #tpu.memory_space<vmem>>, vector<2x1xf32>
    %180 = vector.broadcast %179 : vector<2x1xf32> to vector<2x256xf32>
    %181 = arith.mulf %178, %180 : vector<2x256xf32>
    %182 = arith.addf %177, %181 : vector<2x256xf32>
    %c0_89 = arith.constant 0 : index
    %c176 = arith.constant 176 : index
    %183 = vector.load %arg10[%c0_89, %c176] : memref<2x512xf32, #tpu.memory_space<vmem>>, vector<2x256xf32>
    %c0_90 = arith.constant 0 : index
    %c45 = arith.constant 45 : index
    %184 = vector.load %arg7[%c0_90, %c45] : memref<2x49xf32, #tpu.memory_space<vmem>>, vector<2x1xf32>
    %185 = vector.broadcast %184 : vector<2x1xf32> to vector<2x256xf32>
    %186 = arith.mulf %183, %185 : vector<2x256xf32>
    %187 = arith.addf %182, %186 : vector<2x256xf32>
    %c3_91 = arith.constant 3 : index
    %c0_92 = arith.constant 0 : index
    %188 = vector.load %arg6[%c3_91, %c0_92] : memref<7x256xf32, #tpu.memory_space<vmem>>, vector<1x256xf32>
    %189 = vector.broadcast %188 : vector<1x256xf32> to vector<2x256xf32>
    %190 = arith.mulf %187, %189 : vector<2x256xf32>
    %191 = arith.addf %153, %190 : vector<2x256xf32>
    %c0_93 = arith.constant 0 : index
    %c81 = arith.constant 81 : index
    %192 = vector.load %arg10[%c0_93, %c81] : memref<2x512xf32, #tpu.memory_space<vmem>>, vector<2x256xf32>
    %c0_94 = arith.constant 0 : index
    %c4 = arith.constant 4 : index
    %193 = vector.load %arg7[%c0_94, %c4] : memref<2x49xf32, #tpu.memory_space<vmem>>, vector<2x1xf32>
    %194 = vector.broadcast %193 : vector<2x1xf32> to vector<2x256xf32>
    %195 = arith.mulf %192, %194 : vector<2x256xf32>
    %c0_95 = arith.constant 0 : index
    %c97 = arith.constant 97 : index
    %196 = vector.load %arg10[%c0_95, %c97] : memref<2x512xf32, #tpu.memory_space<vmem>>, vector<2x256xf32>
    %c0_96 = arith.constant 0 : index
    %c11 = arith.constant 11 : index
    %197 = vector.load %arg7[%c0_96, %c11] : memref<2x49xf32, #tpu.memory_space<vmem>>, vector<2x1xf32>
    %198 = vector.broadcast %197 : vector<2x1xf32> to vector<2x256xf32>
    %199 = arith.mulf %196, %198 : vector<2x256xf32>
    %200 = arith.addf %195, %199 : vector<2x256xf32>
    %c0_97 = arith.constant 0 : index
    %c113 = arith.constant 113 : index
    %201 = vector.load %arg10[%c0_97, %c113] : memref<2x512xf32, #tpu.memory_space<vmem>>, vector<2x256xf32>
    %c0_98 = arith.constant 0 : index
    %c18 = arith.constant 18 : index
    %202 = vector.load %arg7[%c0_98, %c18] : memref<2x49xf32, #tpu.memory_space<vmem>>, vector<2x1xf32>
    %203 = vector.broadcast %202 : vector<2x1xf32> to vector<2x256xf32>
    %204 = arith.mulf %201, %203 : vector<2x256xf32>
    %205 = arith.addf %200, %204 : vector<2x256xf32>
    %c0_99 = arith.constant 0 : index
    %c129 = arith.constant 129 : index
    %206 = vector.load %arg10[%c0_99, %c129] : memref<2x512xf32, #tpu.memory_space<vmem>>, vector<2x256xf32>
    %c0_100 = arith.constant 0 : index
    %c25 = arith.constant 25 : index
    %207 = vector.load %arg7[%c0_100, %c25] : memref<2x49xf32, #tpu.memory_space<vmem>>, vector<2x1xf32>
    %208 = vector.broadcast %207 : vector<2x1xf32> to vector<2x256xf32>
    %209 = arith.mulf %206, %208 : vector<2x256xf32>
    %210 = arith.addf %205, %209 : vector<2x256xf32>
    %c0_101 = arith.constant 0 : index
    %c145 = arith.constant 145 : index
    %211 = vector.load %arg10[%c0_101, %c145] : memref<2x512xf32, #tpu.memory_space<vmem>>, vector<2x256xf32>
    %c0_102 = arith.constant 0 : index
    %c32 = arith.constant 32 : index
    %212 = vector.load %arg7[%c0_102, %c32] : memref<2x49xf32, #tpu.memory_space<vmem>>, vector<2x1xf32>
    %213 = vector.broadcast %212 : vector<2x1xf32> to vector<2x256xf32>
    %214 = arith.mulf %211, %213 : vector<2x256xf32>
    %215 = arith.addf %210, %214 : vector<2x256xf32>
    %c0_103 = arith.constant 0 : index
    %c161 = arith.constant 161 : index
    %216 = vector.load %arg10[%c0_103, %c161] : memref<2x512xf32, #tpu.memory_space<vmem>>, vector<2x256xf32>
    %c0_104 = arith.constant 0 : index
    %c39 = arith.constant 39 : index
    %217 = vector.load %arg7[%c0_104, %c39] : memref<2x49xf32, #tpu.memory_space<vmem>>, vector<2x1xf32>
    %218 = vector.broadcast %217 : vector<2x1xf32> to vector<2x256xf32>
    %219 = arith.mulf %216, %218 : vector<2x256xf32>
    %220 = arith.addf %215, %219 : vector<2x256xf32>
    %c0_105 = arith.constant 0 : index
    %c177 = arith.constant 177 : index
    %221 = vector.load %arg10[%c0_105, %c177] : memref<2x512xf32, #tpu.memory_space<vmem>>, vector<2x256xf32>
    %c0_106 = arith.constant 0 : index
    %c46 = arith.constant 46 : index
    %222 = vector.load %arg7[%c0_106, %c46] : memref<2x49xf32, #tpu.memory_space<vmem>>, vector<2x1xf32>
    %223 = vector.broadcast %222 : vector<2x1xf32> to vector<2x256xf32>
    %224 = arith.mulf %221, %223 : vector<2x256xf32>
    %225 = arith.addf %220, %224 : vector<2x256xf32>
    %c4_107 = arith.constant 4 : index
    %c0_108 = arith.constant 0 : index
    %226 = vector.load %arg6[%c4_107, %c0_108] : memref<7x256xf32, #tpu.memory_space<vmem>>, vector<1x256xf32>
    %227 = vector.broadcast %226 : vector<1x256xf32> to vector<2x256xf32>
    %228 = arith.mulf %225, %227 : vector<2x256xf32>
    %229 = arith.addf %191, %228 : vector<2x256xf32>
    %c0_109 = arith.constant 0 : index
    %c82 = arith.constant 82 : index
    %230 = vector.load %arg10[%c0_109, %c82] : memref<2x512xf32, #tpu.memory_space<vmem>>, vector<2x256xf32>
    %c0_110 = arith.constant 0 : index
    %c5 = arith.constant 5 : index
    %231 = vector.load %arg7[%c0_110, %c5] : memref<2x49xf32, #tpu.memory_space<vmem>>, vector<2x1xf32>
    %232 = vector.broadcast %231 : vector<2x1xf32> to vector<2x256xf32>
    %233 = arith.mulf %230, %232 : vector<2x256xf32>
    %c0_111 = arith.constant 0 : index
    %c98 = arith.constant 98 : index
    %234 = vector.load %arg10[%c0_111, %c98] : memref<2x512xf32, #tpu.memory_space<vmem>>, vector<2x256xf32>
    %c0_112 = arith.constant 0 : index
    %c12 = arith.constant 12 : index
    %235 = vector.load %arg7[%c0_112, %c12] : memref<2x49xf32, #tpu.memory_space<vmem>>, vector<2x1xf32>
    %236 = vector.broadcast %235 : vector<2x1xf32> to vector<2x256xf32>
    %237 = arith.mulf %234, %236 : vector<2x256xf32>
    %238 = arith.addf %233, %237 : vector<2x256xf32>
    %c0_113 = arith.constant 0 : index
    %c114 = arith.constant 114 : index
    %239 = vector.load %arg10[%c0_113, %c114] : memref<2x512xf32, #tpu.memory_space<vmem>>, vector<2x256xf32>
    %c0_114 = arith.constant 0 : index
    %c19 = arith.constant 19 : index
    %240 = vector.load %arg7[%c0_114, %c19] : memref<2x49xf32, #tpu.memory_space<vmem>>, vector<2x1xf32>
    %241 = vector.broadcast %240 : vector<2x1xf32> to vector<2x256xf32>
    %242 = arith.mulf %239, %241 : vector<2x256xf32>
    %243 = arith.addf %238, %242 : vector<2x256xf32>
    %c0_115 = arith.constant 0 : index
    %c130 = arith.constant 130 : index
    %244 = vector.load %arg10[%c0_115, %c130] : memref<2x512xf32, #tpu.memory_space<vmem>>, vector<2x256xf32>
    %c0_116 = arith.constant 0 : index
    %c26 = arith.constant 26 : index
    %245 = vector.load %arg7[%c0_116, %c26] : memref<2x49xf32, #tpu.memory_space<vmem>>, vector<2x1xf32>
    %246 = vector.broadcast %245 : vector<2x1xf32> to vector<2x256xf32>
    %247 = arith.mulf %244, %246 : vector<2x256xf32>
    %248 = arith.addf %243, %247 : vector<2x256xf32>
    %c0_117 = arith.constant 0 : index
    %c146 = arith.constant 146 : index
    %249 = vector.load %arg10[%c0_117, %c146] : memref<2x512xf32, #tpu.memory_space<vmem>>, vector<2x256xf32>
    %c0_118 = arith.constant 0 : index
    %c33 = arith.constant 33 : index
    %250 = vector.load %arg7[%c0_118, %c33] : memref<2x49xf32, #tpu.memory_space<vmem>>, vector<2x1xf32>
    %251 = vector.broadcast %250 : vector<2x1xf32> to vector<2x256xf32>
    %252 = arith.mulf %249, %251 : vector<2x256xf32>
    %253 = arith.addf %248, %252 : vector<2x256xf32>
    %c0_119 = arith.constant 0 : index
    %c162 = arith.constant 162 : index
    %254 = vector.load %arg10[%c0_119, %c162] : memref<2x512xf32, #tpu.memory_space<vmem>>, vector<2x256xf32>
    %c0_120 = arith.constant 0 : index
    %c40 = arith.constant 40 : index
    %255 = vector.load %arg7[%c0_120, %c40] : memref<2x49xf32, #tpu.memory_space<vmem>>, vector<2x1xf32>
    %256 = vector.broadcast %255 : vector<2x1xf32> to vector<2x256xf32>
    %257 = arith.mulf %254, %256 : vector<2x256xf32>
    %258 = arith.addf %253, %257 : vector<2x256xf32>
    %c0_121 = arith.constant 0 : index
    %c178 = arith.constant 178 : index
    %259 = vector.load %arg10[%c0_121, %c178] : memref<2x512xf32, #tpu.memory_space<vmem>>, vector<2x256xf32>
    %c0_122 = arith.constant 0 : index
    %c47 = arith.constant 47 : index
    %260 = vector.load %arg7[%c0_122, %c47] : memref<2x49xf32, #tpu.memory_space<vmem>>, vector<2x1xf32>
    %261 = vector.broadcast %260 : vector<2x1xf32> to vector<2x256xf32>
    %262 = arith.mulf %259, %261 : vector<2x256xf32>
    %263 = arith.addf %258, %262 : vector<2x256xf32>
    %c5_123 = arith.constant 5 : index
    %c0_124 = arith.constant 0 : index
    %264 = vector.load %arg6[%c5_123, %c0_124] : memref<7x256xf32, #tpu.memory_space<vmem>>, vector<1x256xf32>
    %265 = vector.broadcast %264 : vector<1x256xf32> to vector<2x256xf32>
    %266 = arith.mulf %263, %265 : vector<2x256xf32>
    %267 = arith.addf %229, %266 : vector<2x256xf32>
    %c0_125 = arith.constant 0 : index
    %c83 = arith.constant 83 : index
    %268 = vector.load %arg10[%c0_125, %c83] : memref<2x512xf32, #tpu.memory_space<vmem>>, vector<2x256xf32>
    %c0_126 = arith.constant 0 : index
    %c6 = arith.constant 6 : index
    %269 = vector.load %arg7[%c0_126, %c6] : memref<2x49xf32, #tpu.memory_space<vmem>>, vector<2x1xf32>
    %270 = vector.broadcast %269 : vector<2x1xf32> to vector<2x256xf32>
    %271 = arith.mulf %268, %270 : vector<2x256xf32>
    %c0_127 = arith.constant 0 : index
    %c99 = arith.constant 99 : index
    %272 = vector.load %arg10[%c0_127, %c99] : memref<2x512xf32, #tpu.memory_space<vmem>>, vector<2x256xf32>
    %c0_128 = arith.constant 0 : index
    %c13 = arith.constant 13 : index
    %273 = vector.load %arg7[%c0_128, %c13] : memref<2x49xf32, #tpu.memory_space<vmem>>, vector<2x1xf32>
    %274 = vector.broadcast %273 : vector<2x1xf32> to vector<2x256xf32>
    %275 = arith.mulf %272, %274 : vector<2x256xf32>
    %276 = arith.addf %271, %275 : vector<2x256xf32>
    %c0_129 = arith.constant 0 : index
    %c115 = arith.constant 115 : index
    %277 = vector.load %arg10[%c0_129, %c115] : memref<2x512xf32, #tpu.memory_space<vmem>>, vector<2x256xf32>
    %c0_130 = arith.constant 0 : index
    %c20 = arith.constant 20 : index
    %278 = vector.load %arg7[%c0_130, %c20] : memref<2x49xf32, #tpu.memory_space<vmem>>, vector<2x1xf32>
    %279 = vector.broadcast %278 : vector<2x1xf32> to vector<2x256xf32>
    %280 = arith.mulf %277, %279 : vector<2x256xf32>
    %281 = arith.addf %276, %280 : vector<2x256xf32>
    %c0_131 = arith.constant 0 : index
    %c131 = arith.constant 131 : index
    %282 = vector.load %arg10[%c0_131, %c131] : memref<2x512xf32, #tpu.memory_space<vmem>>, vector<2x256xf32>
    %c0_132 = arith.constant 0 : index
    %c27 = arith.constant 27 : index
    %283 = vector.load %arg7[%c0_132, %c27] : memref<2x49xf32, #tpu.memory_space<vmem>>, vector<2x1xf32>
    %284 = vector.broadcast %283 : vector<2x1xf32> to vector<2x256xf32>
    %285 = arith.mulf %282, %284 : vector<2x256xf32>
    %286 = arith.addf %281, %285 : vector<2x256xf32>
    %c0_133 = arith.constant 0 : index
    %c147 = arith.constant 147 : index
    %287 = vector.load %arg10[%c0_133, %c147] : memref<2x512xf32, #tpu.memory_space<vmem>>, vector<2x256xf32>
    %c0_134 = arith.constant 0 : index
    %c34 = arith.constant 34 : index
    %288 = vector.load %arg7[%c0_134, %c34] : memref<2x49xf32, #tpu.memory_space<vmem>>, vector<2x1xf32>
    %289 = vector.broadcast %288 : vector<2x1xf32> to vector<2x256xf32>
    %290 = arith.mulf %287, %289 : vector<2x256xf32>
    %291 = arith.addf %286, %290 : vector<2x256xf32>
    %c0_135 = arith.constant 0 : index
    %c163 = arith.constant 163 : index
    %292 = vector.load %arg10[%c0_135, %c163] : memref<2x512xf32, #tpu.memory_space<vmem>>, vector<2x256xf32>
    %c0_136 = arith.constant 0 : index
    %c41 = arith.constant 41 : index
    %293 = vector.load %arg7[%c0_136, %c41] : memref<2x49xf32, #tpu.memory_space<vmem>>, vector<2x1xf32>
    %294 = vector.broadcast %293 : vector<2x1xf32> to vector<2x256xf32>
    %295 = arith.mulf %292, %294 : vector<2x256xf32>
    %296 = arith.addf %291, %295 : vector<2x256xf32>
    %c0_137 = arith.constant 0 : index
    %c179 = arith.constant 179 : index
    %297 = vector.load %arg10[%c0_137, %c179] : memref<2x512xf32, #tpu.memory_space<vmem>>, vector<2x256xf32>
    %c0_138 = arith.constant 0 : index
    %c48 = arith.constant 48 : index
    %298 = vector.load %arg7[%c0_138, %c48] : memref<2x49xf32, #tpu.memory_space<vmem>>, vector<2x1xf32>
    %299 = vector.broadcast %298 : vector<2x1xf32> to vector<2x256xf32>
    %300 = arith.mulf %297, %299 : vector<2x256xf32>
    %301 = arith.addf %296, %300 : vector<2x256xf32>
    %c6_139 = arith.constant 6 : index
    %c0_140 = arith.constant 0 : index
    %302 = vector.load %arg6[%c6_139, %c0_140] : memref<7x256xf32, #tpu.memory_space<vmem>>, vector<1x256xf32>
    %303 = vector.broadcast %302 : vector<1x256xf32> to vector<2x256xf32>
    %304 = arith.mulf %301, %303 : vector<2x256xf32>
    %305 = arith.addf %267, %304 : vector<2x256xf32>
    %306 = vector.extract_strided_slice %305 {offsets = [0, 0], sizes = [1, 256], strides = [1, 1]} : vector<2x256xf32> to vector<1x256xf32>
    %307 = vector.extract_strided_slice %305 {offsets = [1, 0], sizes = [1, 256], strides = [1, 1]} : vector<2x256xf32> to vector<1x256xf32>
    %308 = arith.addf %306, %307 : vector<1x256xf32>
    %c0_141 = arith.constant 0 : index
    %309 = memref.load %arg8[%c0_141] : memref<1xf32, #tpu.memory_space<smem>>
    %310 = vector.broadcast %309 : f32 to vector<1x256xf32>
    %311 = arith.addf %308, %310 : vector<1x256xf32>
    %312 = arith.negf %311 : vector<1x256xf32>
    %313 = math.exp %312 : vector<1x256xf32>
    %cst_142 = arith.constant 1.000000e+00 : f32
    %314 = vector.broadcast %cst_142 : f32 to vector<1x256xf32>
    %315 = arith.addf %314, %313 : vector<1x256xf32>
    %316 = arith.divf %314, %315 : vector<1x256xf32>
    %c0_143 = arith.constant 0 : index
    %c0_144 = arith.constant 0 : index
    %c0_145 = arith.constant 0 : index
    %317 = vector.load %arg9[%c0_143, %c0_144, %c0_145] : memref<1x32x256xf32, #tpu.memory_space<vmem>>, vector<1x32x256xf32>
    %318 = vector.shape_cast %316 : vector<1x256xf32> to vector<1x1x256xf32>
    %319 = vector.broadcast %318 : vector<1x1x256xf32> to vector<1x32x256xf32>
    %320 = arith.mulf %317, %319 : vector<1x32x256xf32>
    %c0_146 = arith.constant 0 : index
    %c0_147 = arith.constant 0 : index
    %c0_148 = arith.constant 0 : index
    %321 = vector.load %arg9[%c0_146, %c0_147, %c0_148] : memref<1x32x256xf32, #tpu.memory_space<vmem>>, vector<1x32x256xf32>
    tpu.vector_store %arg9[%c0_146, %c0_147, %c0_148], %320 {strides = array<i32>} : memref<1x32x256xf32, #tpu.memory_space<vmem>>, vector<1x32x256xf32>,
    return
  }
  func.func @transform_0(%arg0: i32) -> (i32, i32, i32) {
    %c0_i32 = arith.constant 0 : i32
    %c0_i32_0 = arith.constant 0 : i32
    %c0_i32_1 = arith.constant 0 : i32
    return %arg0, %c0_i32, %c0_i32_0 : i32, i32, i32
  }
  func.func @transform_1(%arg0: i32) -> (i32, i32) {
    %c0_i32 = arith.constant 0 : i32
    %c0_i32_0 = arith.constant 0 : i32
    %c0_i32_1 = arith.constant 0 : i32
    return %c0_i32, %c0_i32_0 : i32, i32
  }
  func.func @transform_2(%arg0: i32) -> (i32, i32, i32) {
    %c0_i32 = arith.constant 0 : i32
    %c0_i32_0 = arith.constant 0 : i32
    %c0_i32_1 = arith.constant 0 : i32
    %c0_i32_2 = arith.constant 0 : i32
    return %c0_i32, %c0_i32_0, %c0_i32_1 : i32, i32, i32
  }
  func.func @transform_3(%arg0: i32) -> (i32, i32) {
    %c0_i32 = arith.constant 0 : i32
    %c0_i32_0 = arith.constant 0 : i32
    %c0_i32_1 = arith.constant 0 : i32
    return %c0_i32, %c0_i32_0 : i32, i32
  }
  func.func @transform_4(%arg0: i32) -> (i32, i32) {
    %c0_i32 = arith.constant 0 : i32
    %c0_i32_0 = arith.constant 0 : i32
    %c0_i32_1 = arith.constant 0 : i32
    return %c0_i32, %c0_i32_0 : i32, i32
  }
  func.func @transform_5(%arg0: i32) -> (i32, i32) {
    %c0_i32 = arith.constant 0 : i32
    %c0_i32_0 = arith.constant 0 : i32
    %c0_i32_1 = arith.constant 0 : i32
    return %c0_i32, %c0_i32_0 : i32, i32
  }
  func.func @transform_6(%arg0: i32) -> (i32, i32) {
    %c0_i32 = arith.constant 0 : i32
    %c0_i32_0 = arith.constant 0 : i32
    %c0_i32_1 = arith.constant 0 : i32
    return %c0_i32, %c0_i32_0 : i32, i32
  }
  func.func @transform_7(%arg0: i32) -> i32 {
    %c0_i32 = arith.constant 0 : i32
    %c0_i32_0 = arith.constant 0 : i32
    return %c0_i32 : i32
  }
  func.func @transform_8(%arg0: i32) -> (i32, i32, i32) {
    %c0_i32 = arith.constant 0 : i32
    %c0_i32_0 = arith.constant 0 : i32
    %c0_i32_1 = arith.constant 0 : i32
    return %arg0, %c0_i32, %c0_i32_0 : i32, i32, i32
  }
}

</mosaic_0001>

<bundles_post_ra>
// kernel: attention_forward.1
= control target key start
LH: loop header
LB: loop body
LE: loop exit
PB: predicated region body
PF: predicated region fallthrough
CT: control target
= control target key end

     0   :  { %s2089_s29 = smov 0   ;;  %s2753_s0 = inlined_call_operand.vmem [shape: f32[2,32,256], index: 0, kind: input, shape index: {}]   ;;  %s2754_s1 = inlined_call_operand.vmem [shape: f32[32,2], index: 1, kind: input, shape index: {}]   ;;  %s2755_s2 = inlined_call_operand.vmem [shape: f32[1,1,2], index: 2, kind: input, shape index: {}]   ;;  %s2756_s3 = inlined_call_operand.vmem [shape: f32[32,2], index: 3, kind: input, shape index: {}]   ;;  %s2757_s4 = inlined_call_operand.vmem [shape: f32[32,1], index: 4, kind: input, shape index: {}]   ;;  %s2758_s5 = inlined_call_operand.vmem [shape: f32[7,256], index: 5, kind: input, shape index: {}]   ;;  %s2759_s6 = inlined_call_operand.vmem [shape: f32[2,49], index: 6, kind: input, shape index: {}]   ;;  %s2760_s7 = inlined_call_operand.<no memory space> [shape: f32[1], index: 7, kind: input, shape index: {}]   ;;  %s2761_s8 = inlined_call_operand.vmem [shape: f32[2,32,256], index: 8, kind: output, shape index: {}]  }
   0x1   :  { %13 = sst [smem:[#allocation3]] %s2760_s7 }
   0x2 LB: > { %s1785_s30 = sadd.s32 4294967295, %s1968_s29   ;;  %p1789_p0 = scmp.ge.s32.totalorder %s1968_s29, 1  ;;  %s1968_s29 = sphi %s2089_s29, %s19_s29  }
   0x3   : > { %p263_p1 = scmp.lt.s32.totalorder %s1968_s29, 3 }
   0x5   : > { %p264_p2 = pnand %p1789_p0, %p263_p1 }
   0x7   : > { %267 = sbr.rel (%p264_p2) target bundleno = 1101 (0x44d), region = 52 }
   0xe   : > { %v2100_v0 = vld [vmem:[%s2759_s6] sm:$0x3]  ;;  %p297_p3 = scmp.lt.s32.totalorder %s1785_s30, 1  ;;  %v1970_v1 = vmov 8   ;;  %v1971_v5 = vmov 15   ;;  %v1972_v9 = vmov 10   ;;  %v361_v56 = vlaneseq }
   0xf   : > { %1890 = vset.pattern.permute.xlu1 %v1970_v1  ;;  %1895 = vset.pattern.permute.xlu0 %v1972_v9  ;;  %v2130_v12 = vld [vmem:[%s2759_s6] sm:$0x3]  ;;  %v1973_v17 = vmov 17   ;;  %v1974_v19 = vmov 9   ;;  %v1975_v20 = vmov 22   ;;  %v1976_v21 = vmov 16  }
  0x10   : > { %682 = vperm.xlu1 %1890, %v2100_v0   ;;  %s2784_s30 = smov (!%p297_p3, %s1785_s30), 1  ;;  %v2146_v18 = vld [vmem:[%s2759_s6] sm:$0x3]  ;;  %v1977_v22 = vmov 29   ;;  %v1978_v23 = vmov 23   ;;  %v1979_v25 = vmov 11  }
  0x11   : > { %s1809_s7 = sshll.u32 %s2784_s30, 6  ;;  %v2156_v24 = vld [vmem:[%s2759_s6] sm:$0x3]  ;;  %v1980_v26 = vmov 36   ;;  %v1981_v27 = vmov 24   ;;  %v333_v34 = vld [vmem:[%s2754_s1 + $0x8] sm:$0xff] }
  0x12   : > { %s301_s13 = scalar_lea.vmem %s2753_s0, %s1809_s7  ;;  %v332_v33 = vld [vmem:[%s2754_s1] sm:$0xff]  ;;  %vm340_vm0 = vcmask 15360   ;;  %v334_v37 = vld [vmem:[%s2754_s1 + $0x10] sm:$0xff]  ;;  %v335_v43 = vld [vmem:[%s2754_s1 + $0x18] sm:$0xff]  ;;  %v1982_v52 = vmov 30   ;;  %v2181_v60 = vshrl.u32 %v361_v56, 7  ;;  %s2382_s9 = scalar_lea.vmem %s2761_s8, %s1809_s7 }
  0x13   : > { %v2111_v2 = vld [vmem:[%s301_s13] sm:$0xff]  ;;  %v2113_v3 = vld [vmem:[%s301_s13 + $0x8] sm:$0xff]  ;;  %v2115_v4 = vld [vmem:[%s301_s13 + $0x10] sm:$0xff]  ;;  %v2003_v56 = vmov 40   ;;  %s2018_s18 = smov 78   ;;  %s2021_s23 = smov 79  }
  0x14   : > { %1891 = vset.pattern.permute.xlu1 %v1971_v5  ;;  %v315_v6 = vadd.f32 %v2113_v3, %v2111_v2  ;;  %v2119_v7 = vld [vmem:[%s301_s13 + $0x18] sm:$0xff]  ;;  %v2123_v10 = vld [vmem:[%s301_s13 + $0x20] sm:$0xff]  ;;  %v2125_v11 = vld [vmem:[%s301_s13 + $0x28] sm:$0xff]  ;;  %v2184_v63 = vsub.s32 0, %v2181_v60  ;;  %s2023_s24 = smov 82   ;;  %s2024_s25 = smov 80  }
  0x15   : > { %v318_v8 = vadd.f32 %v2119_v7, %v2115_v4  ;;  %v321_v13 = vadd.f32 %v2125_v11, %v2123_v10  ;;  %v2134_v14 = vld [vmem:[%s301_s13 + $0x30] sm:$0xff]  ;;  %v2136_v15 = vld [vmem:[%s301_s13 + $0x38] sm:$0xff]  ;;  %v354_v59 = vld [vmem:[%s2755_s2] sm:$0x1]  ;;  %s2025_s26 = smov 81   ;;  %vm490_vm1 = vcmask 1040384  }
  0x16   : > { %316 = vadd.xlane.f32.xlu0 %v315_v6  ;;  %v324_v16 = vadd.f32 %v2136_v15, %v2134_v14  ;;  %v358_v5 = vld [vmem:[%s2756_s3 + $0x8] sm:$0xff]  ;;  %v357_v6 = vld [vmem:[%s2756_s3] sm:$0xff]  ;;  %s2027_s30 = smov 112   ;;  %s2028_s7 = smov 96   ;;  %vm536_vm2 = vcmask 916480   ;;  %vm556_vm3 = vcmask 785408  }
  0x17   : > { %s2029_s10 = smov 64   ;;  %s2030_s11 = smov 32   ;;  %vm576_vm4 = vcmask 654336   ;;  %vm597_vm5 = vcmask 523264   ;;  %vm617_vm6 = vcmask 392192   ;;  %vm637_vm7 = vcmask 261120  }
  0x18   : > { %s2031_s12 = smov 48   ;;  %s2032_s15 = smov 83   ;;  %vm818_vm8 = vcmask 637952   ;;  %vm982_vm9 = vcmask 646144   ;;  %vm1310_vm10 = vcmask 662528   ;;  %vm1474_vm11 = vcmask 670720  }
  0x19   : > { %s2034_s19 = smov 127   ;;  %s2035_s20 = smov 126   ;;  %vm1638_vm12 = vcmask 678912   ;;  %vm662_vm13 = vcmask 629760   ;;  %vm826_vm14 = vcmask 1039360   ;;  %vm990_vm15 = vcmask 1031168  }
  0x1a   : > { %319 = vadd.xlane.f32.xlu0 %v318_v8  ;;  %v360_v8 = vld [vmem:[%s2756_s3 + $0x18] sm:$0xff]  ;;  %s2036_s21 = smov 124   ;;  %s2037_s22 = smov 125  }
  0x30   : > { %1010 = vperm.xlu0 %1895, %v2130_v12  }
  0x34   : > { %322 = vadd.xlane.f32.xlu1 %v321_v13  ;;  %1898 = vset.pattern.permute.xlu0 %v1973_v17  ;;  %v359_v13 = vld [vmem:[%s2756_s3 + $0x10] sm:$0xff] }
  0x35   : > { %1029 = vperm.xlu0 %1898, %v2130_v12  }
  0x38   : > { %325 = vadd.xlane.f32.xlu1 %v324_v16 }
  0x39   : > { %1901 = vset.pattern.permute.xlu0 %v1982_v52  ;;  %v2001_v52 = vmov 33  }
  0x49   : > { %701 = vperm.xlu1 %1891, %v2100_v0  }
  0x4d   : > { %1892 = vset.pattern.permute.xlu1 %v1974_v19 }
  0x4e   : > { %846 = vperm.xlu1 %1892, %v2146_v18  }
  0x52   : > { %1893 = vset.pattern.permute.xlu1 %v1975_v20 }
  0x53   : > { %720 = vperm.xlu1 %1893, %v2100_v0  }
  0x57   : > { %1894 = vset.pattern.permute.xlu1 %v1976_v21 }
  0x58   : > { %865 = vperm.xlu1 %1894, %v2146_v18  }
  0x5c   : > { %1896 = vset.pattern.permute.xlu1 %v1977_v22 }
  0x5d   : > { %740 = vperm.xlu1 %1896, %v2100_v0  }
  0x61   : > { %1897 = vset.pattern.permute.xlu1 %v1978_v23 }
  0x62   : > { %884 = vperm.xlu1 %1897, %v2146_v18  }
  0x66   : > { %1899 = vset.pattern.permute.xlu1 %v1979_v25 }
  0x67   : > { %1174 = vperm.xlu1 %1899, %v2156_v24  }
  0x6b   : > { %1900 = vset.pattern.permute.xlu1 %v1980_v26  ;;  %v1983_v26 = vmov 18  }
  0x6c   : > { %759 = vperm.xlu1 %1900, %v2100_v0  }
  0x70   : > { %1902 = vset.pattern.permute.xlu1 %v1981_v27  ;;  %v1984_v27 = vmov 43  }
  0x8f   : > { %v2160_v32 = vpop.permute.xlu1 %682 }
  0xa3   : > { %v317_v28 = vpop.xlane.xlu0 %316 }
  0xa4   : > { %v328_v30 = vmul.f32 0.00390625, %v317_v28  ;;  %v2210_v28 = vld [vmem:[%s2759_s6] sm:$0x3] }
  0xa6   : > { %v336_v35 = vmul.f32 %v332_v33, %v328_v30  ;;  %v1986_v30 = vmov 37   ;;  %v2217_v33 = vld [vmem:[%s2759_s6] sm:$0x3] }
  0xa7   : > { %v320_v29 = vpop.xlane.xlu0 %319 }
  0xa8   : > { %v329_v31 = vmul.f32 0.00390625, %v320_v29  ;;  %v341_v40 = vsel %vm340_vm0, %v336_v35, 0.0  ;;  %v1985_v29 = vmov 12   ;;  %v1989_v35 = vmov 32  }
  0xaa   : > { %v337_v36 = vmul.f32 %v333_v34, %v329_v31  ;;  %v1987_v31 = vmov 31   ;;  %v1988_v34 = vmov 13  }
  0xac   : > { %v342_v41 = vsel %vm340_vm0, %v337_v36, 0.0  ;;  %v1990_v36 = vmov 45  }
  0xad   : > { %v343_v47 = vadd.f32 %v342_v41, %v341_v40  ;;  %v1994_v40 = vmov 25   ;;  %v1995_v41 = vmov 19  }
  0xc1   : > { %v323_v38 = vpop.xlane.xlu1 %322 }
  0xc2   : > { %v330_v39 = vmul.f32 0.00390625, %v323_v38  ;;  %v1992_v38 = vmov 34  }
  0xc4   : > { %v338_v42 = vmul.f32 %v334_v37, %v330_v39  ;;  %v1991_v37 = vmov 27   ;;  %v1993_v39 = vmov 0  }
  0xc5   : > { %v326_v44 = vpop.xlane.xlu1 %325 }
  0xc6   : > { %v344_v45 = vsel %vm340_vm0, %v338_v42, 0.0  ;;  %v331_v46 = vmul.f32 0.00390625, %v326_v44  ;;  %v1996_v42 = vmov 44   ;;  %v1997_v44 = vmov 38  }
  0xc7   : > { %v345_v49 = vadd.f32 %v344_v45, %v343_v47 }
  0xc8   : > { %v339_v48 = vmul.f32 %v335_v43, %v331_v46  ;;  %v1998_v46 = vmov 26  }
  0xc9   : > { %v2228_v43 = vpop.permute.xlu1 %701 }
  0xca   : > { %v346_v50 = vsel %vm340_vm0, %v339_v48, 0.0  ;;  %v1999_v48 = vmov 20  }
  0xcb   : > { %v347_v51 = vadd.f32 %v346_v50, %v345_v49  ;;  %v2000_v50 = vmov 39  }
  0xcd   : > { %v348_v53 = vrot.slane %v347_v51, 4  ;;  %v2232_v45 = vpop.permute.xlu1 %846 }
  0xcf   : > { %v349_v54 = vadd.f32 %v348_v53, %v347_v51  ;;  %v2002_v53 = vmov 46  }
  0xd1   : > { %v350_v55 = vrot.slane %v349_v54, 2 }
  0xd2   : > { %v2235_v47 = vpop.permute.xlu1 %720 }
  0xd3   : > { %v351_v57 = vadd.f32 %v350_v55, %v349_v54  ;;  %v2247_v55 = vpop.permute.xlu0 %1010 }
  0xd5   : > { %v352_v58 = vrot.slane %v351_v57, 1 }
  0xd7   : > { %v353_v61 = vadd.f32 %v352_v58, %v351_v57  ;;  %v2238_v49 = vpop.permute.xlu1 %865  ;;  %v2004_v58 = vmov 47  }
  0xd9   : > { %v355_v62 = vadd.f32 %v354_v59, %v353_v61  ;;  %v2252_v59 = vpop.permute.xlu0 %1029 }
  0xdb   : > { %v356_v1 = vmax.f32 %v355_v62, 0.0  ;;  %v382_v62 = vld [vmem:[%s2757_s4 + $0x8] sm:$0xff] }
  0xdc   : > { %v2241_v51 = vpop.permute.xlu1 %740 }
  0xdd   : > { %v364_v9 = vrot.slane %v356_v1, %v2184_v63  ;;  %v381_v1 = vld [vmem:[%s2757_s4] sm:$0xff] }
  0xdf   : > { %v366_v16 = vmul.f32 %v364_v9, %v358_v5  ;;  %v365_v17 = vmul.f32 %v364_v9, %v357_v6  ;;  %v368_v19 = vmul.f32 %v364_v9, %v360_v8  ;;  %v367_v22 = vmul.f32 %v364_v9, %v359_v13 }
  0xe0   : > { %v2005_v5 = vmov 41  }
  0xe1   : > { %v372_v20 = vsel %vm340_vm0, %v366_v16, 0.0  ;;  %v369_v21 = vsel %vm340_vm0, %v365_v17, 0.0  ;;  %v378_v23 = vsel %vm340_vm0, %v368_v19, 0.0  ;;  %v375_v25 = vsel %vm340_vm0, %v367_v22, 0.0  ;;  %v2244_v54 = vpop.permute.xlu1 %884  ;;  %v2267_v16 = vld [vmem:[%s2759_s6] sm:$0x3] }
  0xe2   : > { %373 = vadd.xlane.f32.xlu1 %v372_v20  ;;  %370 = vadd.xlane.f32.xlu0 %v369_v21  ;;  %2765 = vst [vmem:[#allocation4_spill] sm:$0xff] %v2267_v16  ;;  %v383_v17 = vld [vmem:[%s2757_s4 + $0x10] sm:$0xff]  ;;  %v2006_v21 = vmov 7   ;;  %vm1154_vm0 = vcmask 1022976  }
  0xe6   : > { %376 = vadd.xlane.f32.xlu0 %v375_v25  ;;  %v2250_v57 = vpop.permute.xlu1 %1174 }
  0xeb   : > { %v2255_v61 = vpop.permute.xlu1 %759 }
  0xf3   : > { %1049 = vperm.xlu1 %1902, %v2130_v12  }
  0xf7   : > { %1903 = vset.pattern.permute.xlu1 %v1983_v26 }
  0xf8   : > { %1193 = vperm.xlu1 %1903, %v2156_v24  }
  0xfc   : > { %1905 = vset.pattern.permute.xlu1 %v1984_v27  ;;  %904 = vperm.xlu0 %1901, %v2146_v18  }
  0xfd   : > { %778 = vperm.xlu1 %1905, %v2100_v0  }
 0x100   : > { %1904 = vset.pattern.permute.xlu0 %v1985_v29 }
 0x101   : > { %1906 = vset.pattern.permute.xlu1 %v1986_v30  ;;  %1338 = vperm.xlu0 %1904, %v2210_v28  }
 0x105   : > { %1907 = vset.pattern.permute.xlu0 %v1987_v31 }
 0x106   : > { %1069 = vperm.xlu0 %1907, %v2130_v12  }
 0x10a   : > { %1910 = vset.pattern.permute.xlu0 %v1988_v34 }
 0x10b   : > { %1502 = vperm.xlu0 %1910, %v2217_v33  }
 0x10f   : > { %1913 = vset.pattern.permute.xlu0 %v1989_v35 }
 0x110   : > { %1232 = vperm.xlu0 %1913, %v2156_v24  }
 0x114   : > { %1916 = vset.pattern.permute.xlu0 %v1990_v36 }
 0x115   : > { %1107 = vperm.xlu0 %1916, %v2130_v12  }
 0x119   : > { %1919 = vset.pattern.permute.xlu0 %v1991_v37 }
 0x11a   : > { %1541 = vperm.xlu0 %1919, %v2217_v33  }
 0x11e   : > { %1922 = vset.pattern.permute.xlu0 %v1992_v38  ;;  %v2007_v38 = vmov 48  }
 0x11f   : > { %1560 = vperm.xlu0 %1922, %v2217_v33  }
 0x121   : > { %379 = vadd.xlane.f32.xlu1 %v378_v23 }
 0x123   : > { %1925 = vset.pattern.permute.xlu0 %v1993_v39 }
 0x132   : > { %923 = vperm.xlu1 %1906, %v2146_v18  }
 0x136   : > { %1908 = vset.pattern.permute.xlu1 %v1994_v40  ;;  %v2008_v40 = vmov 14  }
 0x137   : > { %1213 = vperm.xlu1 %1908, %v2156_v24  }
 0x13b   : > { %1909 = vset.pattern.permute.xlu1 %v1995_v41  ;;  %v2009_v41 = vmov 3  }
 0x13c   : > { %1357 = vperm.xlu1 %1909, %v2210_v28  }
 0x140   : > { %1911 = vset.pattern.permute.xlu1 %v1996_v42 }
 0x141   : > { %942 = vperm.xlu1 %1911, %v2146_v18  }
 0x145   : > { %1912 = vset.pattern.permute.xlu1 %v1997_v44  ;;  %v2010_v44 = vmov 35  }
 0x146   : > { %1088 = vperm.xlu1 %1912, %v2130_v12  }
 0x14a   : > { %1914 = vset.pattern.permute.xlu1 %v1998_v46 }
 0x14b   : > { %1377 = vperm.xlu1 %1914, %v2210_v28  }
 0x14f   : > { %1915 = vset.pattern.permute.xlu1 %v1999_v48  ;;  %v2011_v48 = vmov 42  }
 0x150   : > { %1521 = vperm.xlu1 %1915, %v2217_v33  }
 0x154   : > { %1917 = vset.pattern.permute.xlu1 %v2000_v50 }
 0x155   : > { %1251 = vperm.xlu1 %1917, %v2156_v24  }
 0x159   : > { %1918 = vset.pattern.permute.xlu1 %v2001_v52  ;;  %v2012_v52 = vmov 6  }
 0x15a   : > { %1396 = vperm.xlu1 %1918, %v2210_v28  }
 0x15e   : > { %1920 = vset.pattern.permute.xlu1 %v2002_v53 }
 0x15f   : > { %1270 = vperm.xlu1 %1920, %v2156_v24  }
 0x163   : > { %1921 = vset.pattern.permute.xlu1 %v2003_v56 }
 0x164   : > { %1415 = vperm.xlu1 %1921, %v2210_v28  }
 0x168   : > { %1923 = vset.pattern.permute.xlu1 %v2004_v58 }
 0x169   : > { %1434 = vperm.xlu1 %1923, %v2210_v28  }
 0x16d   : > { %1924 = vset.pattern.permute.xlu1 %v2005_v5 }
 0x16e   : > { %1579 = vperm.xlu1 %1924, %v2217_v33  }
 0x16f   : > { %v374_v6 = vpop.xlane.xlu1 %373  ;;  %v371_v8 = vpop.xlane.xlu0 %370 }
 0x170   : > { %v386_v9 = vadd.f32 %v382_v62, %v374_v6  ;;  %v385_v13 = vadd.f32 %v381_v1, %v371_v8 }
 0x172   : > { %v1795_v19 = vmul.f32 -1.442695, %v386_v9  ;;  %v1794_v20 = vmul.f32 -1.442695, %v385_v13  ;;  %1927 = vset.pattern.permute.xlu1 %v2006_v21  ;;  %v2013_v13 = vmov 1   ;;  %v2304_v21 = vsub.s32 1, %v2181_v60 }
 0x173   : > { %v377_v22 = vpop.xlane.xlu0 %376  ;;  %521 = vperm.xlu1 %1927, %v2267_v16   ;;  %v2277_v42 = vpop.permute.xlu1 %1049 }
 0x174   : > { %1942 = vpow2.f32 %v1795_v19  ;;  %v387_v23 = vadd.f32 %v383_v17, %v377_v22  ;;  %v2014_v19 = vmov 2   ;;  %v2015_v22 = vmov 1983009808  }
 0x175   : > { %1944 = vpow2.f32 %v1794_v20 }
 0x176   : > { %v1796_v25 = vmul.f32 -1.442695, %v387_v23  ;;  %v653_v23 = vunpack.c.l.s4 %v2015_v22 }
 0x177   : > { %1928 = vset.pattern.permute.xlu1 %v1993_v39  ;;  %v2280_v46 = vpop.permute.xlu1 %1193 }
 0x178   : > { %1946 = vpow2.f32 %v1796_v25  ;;  %v1799_v25 = vld [vmem:[%s2758_s5 + $0x1] ss:$8 sm:$0x3] }
 0x17c   : > { %v2283_v50 = vpop.permute.xlu1 %778 }
 0x17e   : > { %v1943_v26 = vpop.eup %1942 }
 0x17f   : > { %v1945_v27 = vpop.eup %1944  ;;  %v402_v29 = vadd.f32 1.0, %v1943_v26  ;;  %v2016_v26 = vmov 21  }
 0x180   : > { %v401_v30 = vadd.f32 1.0, %v1945_v27  ;;  %v654_v27 = vunpack.c.0.s8 %v653_v23 }
 0x181   : > { %1948 = vrcp.f32 %v402_v29  ;;  %v806_v29 = vrot.slane %v1799_v25, %v2304_v21 }
 0x182   : > { %v1947_v31 = vpop.eup %1946  ;;  %1950 = vrcp.f32 %v401_v30  ;;  %v2315_v30 = vsub.s32 %v654_v27, %v2181_v60 }
 0x183   : > { %v403_v34 = vadd.f32 1.0, %v1947_v31 }
 0x185   : > { %1952 = vrcp.f32 %v403_v34  ;;  %v2317_v34 = vpop.permute.xlu0 %904 }
 0x18b   : > { %v1949_v35 = vpop.eup %1948 }
 0x18c   : > { %v1951_v36 = vpop.eup %1950  ;;  %420 = vperm.xlu1 %1928, %v1949_v35  }
 0x18d   : > { %415 = vperm.xlu0 %1925, %v1951_v36   ;;  %v1800_v36 = vld [vmem:[%s2758_s5 + $0x2] ss:$8 sm:$0x3] }
 0x18f   : > { %v1953_v37 = vpop.eup %1952 }
 0x190   : > { %425 = vperm.xlu1 %1928, %v1953_v37   ;;  %v2017_v37 = vmov 28  }
 0x191   : > { %1926 = vset.pattern.permute.xlu0 %v2007_v38 }
 0x192   : > { %1598 = vperm.xlu0 %1926, %v2217_v33  }
 0x196   : > { %1930 = vset.pattern.permute.xlu0 %v2008_v40  ;;  %v966_v40 = vrot.slane %v1800_v36, %v2184_v63 }
 0x197   : > { %541 = vperm.xlu0 %1930, %v2267_v16  }
 0x19b   : > { %1933 = vset.pattern.permute.xlu0 %v2009_v41  ;;  %v970_v41 = vrot.slane %v1800_v36, %v2304_v21 }
 0x19c   : > { %998 = vperm.xlu0 %1933, %v2130_v12   ;;  %v384_v12 = vld [vmem:[%s2757_s4 + $0x18] sm:$0xff] }
 0x1a0   : > { %1936 = vset.pattern.permute.xlu0 %v2010_v44  ;;  %v971_v44 = vcombine.low %v966_v40, %v970_v41 }
 0x1a1   : > { %602 = vperm.xlu0 %1936, %v2267_v16  }
 0x1a5   : > { %1938 = vset.pattern.permute.xlu0 %v2011_v48 }
 0x1a6   : > { %622 = vperm.xlu0 %1938, %v2267_v16  }
 0x1aa   : > { %1939 = vset.pattern.permute.xlu0 %v2012_v52  ;;  %v2019_v52 = vmov 0.0  }
 0x1ab   : > { %1490 = vperm.xlu0 %1939, %v2217_v33   ;;  %489 = vst [vmem:[#allocation2 + $0x6] sm:$0x3] %v2019_v52  ;;  %488 = vst [vmem:[#allocation2] sm:$0x3] %v2019_v52 }
 0x1ae   : > { %v380_v53 = vpop.xlane.xlu1 %379 }
 0x1af   : > { %v388_v56 = vadd.f32 %v384_v12, %v380_v53  ;;  %1941 = vset.pattern.permute.xlu0 %v2007_v38  ;;  %v1801_v38 = vld [vmem:[%s2758_s5 + $0x3] ss:$8 sm:$0x3] }
 0x1b0   : > { %v1131_v12 = vrot.slane %v1801_v38, %v2184_v63  ;;  %v1135_v53 = vrot.slane %v1801_v38, %v2304_v21 }
 0x1b1   : > { %v1797_v58 = vmul.f32 -1.442695, %v388_v56  ;;  %v2333_v56 = vpop.permute.xlu0 %1338 }
 0x1b2   : > { %v2289_v62 = vpop.permute.xlu1 %923  ;;  %v1136_v22 = vcombine.low %v1131_v12, %v1135_v53 }
 0x1b3   : > { %1954 = vpow2.f32 %v1797_v58  ;;  %v978_v58 = vrot.slane %v971_v44, %v2315_v30 }
 0x1b6   : > { %v2291_v5 = vpop.permute.xlu1 %1213 }
 0x1bb   : > { %v2293_v8 = vpop.permute.xlu1 %1357 }
 0x1bd   : > { %v1955_v1 = vpop.eup %1954 }
 0x1be   : > { %v404_v6 = vadd.f32 1.0, %v1955_v1  ;;  %v1802_v1 = vld [vmem:[%s2758_s5 + $0x4] ss:$8 sm:$0x3] }
 0x1bf   : > { %v1294_v23 = vrot.slane %v1802_v1, %v2184_v63 }
 0x1c0   : > { %1956 = vrcp.f32 %v404_v6  ;;  %v2295_v9 = vpop.permute.xlu1 %942  ;;  %v1803_v6 = vld [vmem:[%s2758_s5 + $0x5] ss:$8 sm:$0x3] }
 0x1c5   : > { %v2297_v17 = vpop.permute.xlu1 %1088 }
 0x1ca   : > { %v1957_v33 = vpop.eup %1956  ;;  %v2301_v20 = vpop.permute.xlu1 %1377 }
 0x1cb   : > { %430 = vperm.xlu1 %1928, %v1957_v33   ;;  %v2020_v33 = vmov 4  }
 0x1cf   : > { %1929 = vset.pattern.permute.xlu1 %v2013_v13  ;;  %v1458_v13 = vrot.slane %v1803_v6, %v2184_v63 }
 0x1d0   : > { %670 = vperm.xlu1 %1929, %v2100_v0   ;;  %v802_v0 = vrot.slane %v1799_v25, %v2184_v63  ;;  %v1298_v25 = vrot.slane %v1802_v1, %v2304_v21 }
 0x1d2   : > { %v807_v31 = vcombine.low %v802_v0, %v806_v29  ;;  %v2022_v29 = vmov 5  }
 0x1d4   : > { %1931 = vset.pattern.permute.xlu1 %v2014_v19  ;;  %v814_v35 = vrot.slane %v807_v31, %v2315_v30  ;;  %v1462_v19 = vrot.slane %v1803_v6, %v2304_v21  ;;  %v2350_v31 = vpop.permute.xlu0 %1069 }
 0x1d5   : > { %834 = vperm.xlu1 %1931, %v2146_v18   ;;  %v2312_v18 = vpop.permute.xlu1 %1521 }
 0x1d6   : > { %815 = vrot.lane.b32.xlu0 %v814_v35, %s2018_s18  ;;  %v1299_v35 = vcombine.low %v1294_v23, %v1298_v25  ;;  %s2033_s18 = smov 77  }
 0x1d8   : > { %v2358_v38 = vpop.permute.xlu0 %1502 }
 0x1d9   : > { %1932 = vset.pattern.permute.xlu1 %v2016_v26  ;;  %v2329_v48 = vpop.permute.xlu1 %1251  ;;  %v1463_v26 = vcombine.low %v1458_v13, %v1462_v19 }
 0x1da   : > { %561 = vperm.xlu1 %1932, %v2267_v16   ;;  %979 = vrot.lane.b32.xlu0 %v978_v58, %s2021_s23  ;;  %s2038_s23 = smov 123  }
 0x1db   : > { %v1470_v0 = vrot.slane %v1463_v26, %v2315_v30 }
 0x1dc   : > { %v2363_v40 = vpop.permute.xlu0 %1232 }
 0x1dd   : > { %v2347_v27 = vpop.permute.xlu1 %1396 }
 0x1de   : > { %1934 = vset.pattern.permute.xlu1 %v2017_v37  ;;  %2766 = vst [vmem:[#allocation5_spill] sm:$0xff] %v2347_v27  ;;  %1471 = vrot.lane.b32.xlu0 %v1470_v0, %s2023_s24  ;;  %v1306_v37 = vrot.slane %v1299_v35, %v2315_v30  ;;  %s2039_s24 = smov 122  }
 0x1df   : > { %582 = vperm.xlu1 %1934, %v2267_v16  }
 0x1e0   : > { %v2367_v44 = vpop.permute.xlu0 %1107 }
 0x1e1   : > { %v2354_v36 = vpop.permute.xlu1 %1270  ;;  %2768 = vst [vmem:[#allocation7_spill] sm:$0xff] %v2367_v44 }
 0x1e3   : > { %1935 = vset.pattern.permute.xlu1 %v2020_v33 }
 0x1e4   : > { %1162 = vperm.xlu1 %1935, %v2156_v24   ;;  %v1143_v24 = vrot.slane %v1136_v22, %v2315_v30  ;;  %v2371_v12 = vpop.permute.xlu0 %1541 }
 0x1e8   : > { %1937 = vset.pattern.permute.xlu1 %v2022_v29  ;;  %v2375_v58 = vpop.permute.xlu0 %1560 }
 0x1e9   : > { %1326 = vperm.xlu1 %1937, %v2210_v28   ;;  %v2361_v28 = vpop.permute.xlu1 %1415 }
 0x1ea   : > { %2767 = vst [vmem:[#allocation6_spill] sm:$0xff] %v2361_v28 }
 0x1ed   : > { %1144 = vrot.lane.b32.xlu1 %v1143_v24, %s2024_s25  ;;  %v2365_v41 = vpop.permute.xlu1 %1434 }
 0x1ee   : > { %1940 = vset.pattern.permute.xlu1 %v1993_v39 }
 0x1f1   : > { %1307 = vrot.lane.b32.xlu1 %v1306_v37, %s2025_s26  ;;  %v2369_v52 = vpop.permute.xlu1 %1579  ;;  %s2040_s26 = smov 51  }
 0x1f2   : > { %2769 = vst [vmem:[#allocation8_spill] sm:$0xff] %v2369_v52 }
 0x1f5   : > { %v2373_v53 = vpop.permute.xlu1 %521 }
 0x20b   : > { %v421_v39 = vpop.permute.xlu1 %420 }
 0x20c   : > { %v435_v1 = vmul.f32 %v421_v39, %v2115_v4  ;;  %v436_v6 = vmul.f32 %v421_v39, %v2119_v7  ;;  %v416_v33 = vpop.permute.xlu0 %415 }
 0x20d   : > { %v433_v13 = vmul.f32 %v416_v33, %v2111_v2  ;;  %v434_v19 = vmul.f32 %v416_v33, %v2113_v3 }
 0x20e   : > { %482 = vst [vmem:[%s2382_s9 + $0x10] sm:$0xff] %v435_v1  ;;  %483 = vst [vmem:[%s2382_s9 + $0x18] sm:$0xff] %v436_v6 }
 0x20f   : > { %480 = vst [vmem:[%s2382_s9] sm:$0xff] %v433_v13  ;;  %481 = vst [vmem:[%s2382_s9 + $0x8] sm:$0xff] %v434_v19  ;;  %v426_v22 = vpop.permute.xlu1 %425  ;;  %v441_v4 = vadd.f32 %v435_v1, %v433_v13  ;;  %v450_v7 = vadd.f32 %v436_v6, %v434_v19 }
 0x210   : > { %v437_v23 = vmul.f32 %v426_v22, %v2123_v10  ;;  %v438_v25 = vmul.f32 %v426_v22, %v2125_v11 }
 0x211   : > { %v2396_v26 = vpop.permute.xlu0 %1598 }
 0x212   : > { %484 = vst [vmem:[%s2382_s9 + $0x20] sm:$0xff] %v437_v23  ;;  %485 = vst [vmem:[%s2382_s9 + $0x28] sm:$0xff] %v438_v25  ;;  %v442_v29 = vadd.f32 %v441_v4, %v437_v23  ;;  %v451_v2 = vadd.f32 %v450_v7, %v438_v25  ;;  %v462_v35 = vmax.f32 %v433_v13, %v437_v23 }
 0x213   : > { %2770 = vst [vmem:[#allocation9_spill] sm:$0xff] %v2396_v26  ;;  %v471_v37 = vmax.f32 %v434_v19, %v438_v25 }
 0x216   : > { %v2404_v10 = vpop.permute.xlu0 %541 }
 0x217   : > { %2773 = vst [vmem:[#allocation12_spill] sm:$0xff] %v2404_v10 }
 0x21b   : > { %v999_v19 = vpop.permute.xlu0 %998 }
 0x24a   : > { %v431_v0 = vpop.permute.xlu1 %430 }
 0x24b   : > { %v2399_v3 = vmul.f32 %v431_v0, %v2134_v14  ;;  %v2402_v24 = vmul.f32 %v431_v0, %v2136_v15 }
 0x24d   : > { %2771 = vst [vmem:[#allocation10_spill] sm:$0xff] %v2399_v3  ;;  %2772 = vst [vmem:[#allocation11_spill] sm:$0xff] %v2402_v24  ;;  %v443_v11 = vadd.f32 %v442_v29, %v2399_v3  ;;  %v452_v39 = vadd.f32 %v451_v2, %v2402_v24  ;;  %v463_v33 = vmax.f32 %v435_v1, %v2399_v3 }
 0x24e   : > { %v472_v22 = vmax.f32 %v436_v6, %v2402_v24 }
 0x24f   : > { %v444_v4 = vrot.slane %v443_v11, 4  ;;  %v453_v7 = vrot.slane %v452_v39, 4  ;;  %v464_v16 = vmax.f32 %v462_v35, %v463_v33  ;;  %v671_v26 = vpop.permute.xlu1 %670 }
 0x250   : > { %v473_v14 = vmax.f32 %v471_v37, %v472_v22  ;;  %v2410_v37 = vpop.permute.xlu0 %602 }
 0x251   : > { %v445_v52 = vadd.f32 %v444_v4, %v443_v11  ;;  %v454_v15 = vadd.f32 %v453_v7, %v452_v39  ;;  %v465_v0 = vrot.slane %v464_v16, 4  ;;  %v2026_v7 = vmov 269488144  }
 0x252   : > { %v474_v13 = vrot.slane %v473_v14, 4 }
 0x253   : > { %v446_v23 = vrot.slane %v445_v52, 2  ;;  %v455_v25 = vrot.slane %v454_v15, 2  ;;  %v466_v10 = vmax.f32 %v464_v16, %v465_v0  ;;  %v512_v16 = vunpack.c.l.s4 %v2026_v7 }
 0x254   : > { %v475_v29 = vmax.f32 %v473_v14, %v474_v13  ;;  %v835_v28 = vpop.permute.xlu1 %834 }
 0x255   : > { %v447_v2 = vadd.f32 %v446_v23, %v445_v52  ;;  %v456_v27 = vadd.f32 %v455_v25, %v454_v15  ;;  %v467_v1 = vrot.slane %v466_v10, 2  ;;  %v513_v25 = vunpack.c.0.s8 %v512_v16 }
 0x256   : > { %v476_v3 = vrot.slane %v475_v29, 2 }
 0x257   : > { %v448_v6 = vrot.slane %v447_v2, 1  ;;  %v457_v24 = vrot.slane %v456_v27, 1  ;;  %v468_v44 = vmax.f32 %v466_v10, %v467_v1 }
 0x258   : > { %v477_v35 = vmax.f32 %v475_v29, %v476_v3  ;;  %v2416_v29 = vpop.permute.xlu0 %622 }
 0x259   : > { %v449_v11 = vadd.f32 %v448_v6, %v447_v2  ;;  %v458_v39 = vadd.f32 %v457_v24, %v456_v27  ;;  %v469_v33 = vrot.slane %v468_v44, 1  ;;  %v2412_v4 = vpop.permute.xlu1 %561  ;;  %v2419_v27 = vsub.s32 %v513_v25, %v2181_v60 }
 0x25a   : > { %v478_v22 = vrot.slane %v477_v35, 1 }
 0x25b   : > { %v460_v14 = vmul.f32 0.03125, %v449_v11  ;;  %v461_v52 = vmul.f32 0.03125, %v458_v39  ;;  %v470_v15 = vmax.f32 %v468_v44, %v469_v33  ;;  %v678_v2 = vrot.slane %v671_v26, %v2419_v27 }
 0x25c   : > { %v479_v0 = vmax.f32 %v477_v35, %v478_v22  ;;  %v1491_v1 = vpop.permute.xlu0 %1490  ;;  %v842_v6 = vrot.slane %v835_v28, %v2419_v27  ;;  %v1006_v44 = vrot.slane %v999_v19, %v2419_v27  ;;  %v690_v19 = vrot.slane %v2160_v32, %v2419_v27 }
 0x25d   : > { %v491_v13 = vsel %vm490_vm1, %v460_v14, %v470_v15  ;;  %v1498_v39 = vrot.slane %v1491_v1, %v2419_v27  ;;  %v1018_v14 = vrot.slane %v2247_v55, %v2419_v27  ;;  %v709_v32 = vrot.slane %v2228_v43, %v2419_v27 }
 0x25e   : > { %v492_v23 = vsel %vm490_vm1, %v461_v52, %v479_v0  ;;  %v2414_v3 = vpop.permute.xlu1 %582  ;;  %v912_v43 = vrot.slane %v2317_v34, %v2419_v27  ;;  %vm1318_vm1 = vcmask 1014784  }
 0x25f   : > { %v495_v10 = vcombine.low %v491_v13, %v492_v23 }
 0x261   : > { %1798 = vst.sshfl [vmem:[#allocation2 + $0x2] sm:$0x33 pattern:$0x76325410] %v495_v10 }
 0x263   : > { %v1163_v24 = vpop.permute.xlu1 %1162 }
 0x264   : > { %v1170_v35 = vrot.slane %v1163_v24, %v2419_v27  ;;  %v892_v24 = vrot.slane %v2244_v54, %v2419_v27  ;;  %v854_v54 = vrot.slane %v2232_v45, %v2419_v27 }
 0x268   : > { %v666_v11 = vld [vmem:[#allocation2] sm:$0x3f]  ;;  %v1327_v16 = vpop.permute.xlu1 %1326 }
 0x269   : > { %v2426_v33 = vmul.f32 %v678_v2, %v666_v11  ;;  %v830_v22 = vld [vmem:[#allocation2] sm:$0x3f]  ;;  %v1334_v23 = vrot.slane %v1327_v16, %v2419_v27  ;;  %v692_v55 = vmul.f32 %v690_v19, %v666_v11  ;;  %v1201_v19 = vrot.slane %v2280_v46, %v2419_v27 }
 0x26a   : > { %v994_v7 = vld [vmem:[#allocation2] sm:$0x3f]  ;;  %v2430_v52 = vmul.f32 %v842_v6, %v830_v22  ;;  %v894_v1 = vmul.f32 %v892_v24, %v830_v22  ;;  %v711_v6 = vmul.f32 %v709_v32, %v666_v11 }
 0x26b   : > { %v2432_v26 = vmul.f32 %v1006_v44, %v994_v7  ;;  %v1158_v28 = vld [vmem:[#allocation2] sm:$0x3f]  ;;  %v1020_v25 = vmul.f32 %v1018_v14, %v994_v7  ;;  %694 = vrot.lane.b32.xlu1 %v692_v55, %s2027_s30  ;;  %v1182_v44 = vrot.slane %v2250_v57, %v2419_v27  ;;  %v728_v57 = vrot.slane %v2235_v47, %v2419_v27 }
 0x26c   : > { %v2434_v15 = vld [vmem:[#allocation2] sm:$0x3f]  ;;  %v2438_v0 = vmul.f32 %v1170_v35, %v1158_v28  ;;  %v1203_v34 = vmul.f32 %v1201_v19, %v1158_v28  ;;  %v786_v47 = vrot.slane %v2283_v50, %v2419_v27  ;;  %v1037_v50 = vrot.slane %v2252_v59, %v2419_v27 }
 0x26d   : > { %v2441_v13 = vmul.f32 %v1498_v39, %v2434_v15  ;;  %v2444_v10 = vld [vmem:[#allocation2] sm:$0x3f]  ;;  %1022 = vrot.lane.b32.xlu0 %v1020_v25, %s2027_s30  ;;  %v1184_v35 = vmul.f32 %v1182_v44, %v1158_v28  ;;  %v856_v39 = vmul.f32 %v854_v54, %v830_v22  ;;  %v730_v45 = vmul.f32 %v728_v57, %v666_v11 }
 0x26e   : > { %v2449_v2 = vmul.f32 %v1334_v23, %v2444_v10  ;;  %v2461_v16 = vld [vmem:[#allocation2 + $0x2] sm:$0x3f]  ;;  %v873_v23 = vrot.slane %v2238_v49, %v2419_v27  ;;  %v748_v11 = vrot.slane %v2241_v51, %v2419_v27  ;;  %v1077_v49 = vrot.slane %v2350_v31, %v2419_v27 }
 0x26f   : > { %713 = vrot.lane.b32.xlu1 %v711_v6, %s2028_s7  ;;  %v914_v14 = vmul.f32 %v912_v43, %v2461_v16  ;;  %v738_v55 = vld [vmem:[#allocation2 + $0x2] sm:$0x3f]  ;;  %v1039_v51 = vmul.f32 %v1037_v50, %v994_v7  ;;  %v1365_v28 = vrot.slane %v2293_v8, %v2419_v27  ;;  %v1096_v59 = vrot.slane %v2297_v17, %v2419_v27 }
 0x270   : > { %v875_v25 = vmul.f32 %v873_v23, %v830_v22  ;;  %v788_v46 = vmul.f32 %v786_v47, %v738_v55  ;;  %v750_v24 = vmul.f32 %v748_v11, %v738_v55  ;;  %v2482_v32 = vld [vmem:[#allocation2 + $0x2] sm:$0x3f]  ;;  %v1057_v7 = vrot.slane %v2277_v42, %v2419_v27 }
 0x271   : > { %896 = vrot.lane.b32.xlu0 %v894_v1, %s2024_s25  ;;  %v1079_v22 = vmul.f32 %v1077_v49, %v2482_v32  ;;  %v767_v1 = vrot.slane %v2255_v61, %v2419_v27  ;;  %v1367_v31 = vmul.f32 %v1365_v28, %v2444_v10  ;;  %v1047_v44 = vld [vmem:[#allocation2 + $0x2] sm:$0xf]  ;;  %v1098_v8 = vmul.f32 %v1096_v59, %v2482_v32 }
 0x272   : > { %v1059_v61 = vmul.f32 %v1057_v7, %v1047_v44  ;;  %v2505_v54 = vld [vmem:[#allocation2 + $0x2] sm:$0x3f]  ;;  %v1346_v17 = vrot.slane %v2333_v56, %v2419_v27  ;;  %v1259_v57 = vrot.slane %v2329_v48, %v2419_v27  ;;  %v1549_v19 = vrot.slane %v2371_v12, %v2419_v27  ;;  %v2775_v44 = vld [vmem:[#allocation5_spill] sm:$0xff] }
 0x273   : > { %858 = vrot.lane.b32.xlu1 %v856_v39, %s2027_s30  ;;  %v769_v6 = vmul.f32 %v767_v1, %v738_v55  ;;  %v1211_v43 = vld [vmem:[#allocation2 + $0x2] sm:$0x3f]  ;;  %v1221_v48 = vrot.slane %v2291_v5, %v2419_v27  ;;  %v1278_v23 = vrot.slane %v2354_v36, %v2419_v27  ;;  %v1568_v55 = vrot.slane %v2375_v58, %v2419_v27 }
 0x274   : > { %v1348_v39 = vmul.f32 %v1346_v17, %v2444_v10  ;;  %v1804_v12 = vld [vmem:[%s2758_s5 + $0x6] ss:$8 sm:$0x3]  ;;  %v1240_v49 = vrot.slane %v2363_v40, %v2419_v27  ;;  %v529_v40 = vrot.slane %v2373_v53, %v2419_v27  ;;  %v1404_v7 = vrot.slane %v2775_v44, %v2419_v27  ;;  %v2776_v17 = vld [vmem:[#allocation6_spill] sm:$0xff] }
 0x275   : > { %1186 = vrot.lane.b32.xlu0 %v1184_v35, %s2027_s30  ;;  %v1385_v35 = vrot.slane %v2301_v20, %v2419_v27  ;;  %v931_v20 = vrot.slane %v2289_v62, %v2419_v27  ;;  %v1223_v62 = vmul.f32 %v1221_v48, %v1211_v43  ;;  %v1280_v5 = vmul.f32 %v1278_v23, %v1211_v43  ;;  %v2774_v28 = vld [vmem:[#allocation7_spill] sm:$0xff]  ;;  %v2780_v48 = vld [vmem:[#allocation4_spill] sm:$0xff] }
 0x276   : > { %v1622_v36 = vrot.slane %v1804_v12, %v2184_v63  ;;  %v1626_v47 = vrot.slane %v1804_v12, %v2304_v21  ;;  %v1115_v1 = vrot.slane %v2774_v28, %v2419_v27  ;;  %v816_v12 = vpop.permute.xlu0 %815 }
 0x277   : > { %732 = vrot.lane.b32.xlu1 %v730_v45, %s2024_s25  ;;  %v1387_v42 = vmul.f32 %v1385_v35, %v2505_v54  ;;  %v2521_v45 = vld [vmem:[#allocation2 + $0x2] sm:$0x3f]  ;;  %v933_v56 = vmul.f32 %v931_v20, %v2461_v16  ;;  %v1406_v35 = vmul.f32 %v1404_v7, %v2505_v54  ;;  %v2778_v20 = vld [vmem:[#allocation9_spill] sm:$0xff] }
 0x278   : > { %v1551_v10 = vmul.f32 %v1549_v19, %v2521_v45  ;;  %v1570_v11 = vmul.f32 %v1568_v55, %v2521_v45  ;;  %v1627_v58 = vcombine.low %v1622_v36, %v1626_v47 }
 0x279   : > { %916 = vrot.lane.b32.xlu0 %v914_v14, %s2029_s10  ;;  %v1261_v14 = vmul.f32 %v1259_v57, %v1211_v43 }
 0x27b   : > { %877 = vrot.lane.b32.xlu1 %v875_v25, %s2028_s7 }
 0x27d   : > { %1205 = vrot.lane.b32.xlu0 %v1203_v34, %s2028_s7  ;;  %v1510_v34 = vrot.slane %v2358_v38, %v2419_v27  ;;  %v950_v38 = vrot.slane %v2295_v9, %v2419_v27  ;;  %v1242_v9 = vmul.f32 %v1240_v49, %v1211_v43 }
 0x27f   : > { %752 = vrot.lane.b32.xlu1 %v750_v24, %s2029_s10  ;;  %v1512_v25 = vmul.f32 %v1510_v34, %v2434_v15  ;;  %v1442_v24 = vrot.slane %v2365_v41, %v2419_v27  ;;  %v2563_v41 = vld [vmem:[#allocation2] sm:$0x3f]  ;;  %v630_v34 = vrot.slane %v2416_v29, %v2419_v27 }
 0x281   : > { %790 = vrot.lane.b32.xlu0 %v788_v46, %s2030_s11  ;;  %v952_v46 = vmul.f32 %v950_v38, %v2461_v16  ;;  %v1444_v50 = vmul.f32 %v1442_v24, %v2505_v54  ;;  %v1529_v16 = vrot.slane %v2312_v18, %v2419_v27  ;;  %v641_v18 = vld [vmem:[%s2758_s5] ss:$8 sm:$0x3] }
 0x282   : > { %v646_v53 = vrot.slane %v641_v18, %v2184_v63  ;;  %v650_v59 = vrot.slane %v641_v18, %v2304_v21 }
 0x283   : > { %1041 = vrot.lane.b32.xlu1 %v1039_v51, %s2028_s7  ;;  %v1531_v51 = vmul.f32 %v1529_v16, %v2434_v15  ;;  %v1117_v15 = vmul.f32 %v1115_v1, %v2482_v32 }
 0x284   : > { %v651_v32 = vcombine.low %v646_v53, %v650_v59 }
 0x285   : > { %1081 = vrot.lane.b32.xlu0 %v1079_v22, %s2029_s10  ;;  %v1634_v22 = vrot.slane %v1627_v58, %v2315_v30 }
 0x286   : > { %v658_v43 = vrot.slane %v651_v32, %v2315_v30  ;;  %v2779_v30 = vld [vmem:[#allocation12_spill] sm:$0xff] }
 0x287   : > { %771 = vrot.lane.b32.xlu1 %v769_v6, %s2031_s12  ;;  %v531_v6 = vmul.f32 %v529_v40, %v2563_v41  ;;  %v549_v19 = vrot.slane %v2779_v30, %v2419_v27 }
 0x289   : > { %1369 = vrot.lane.b32.xlu0 %v1367_v31, %s2028_s7  ;;  %v569_v31 = vrot.slane %v2412_v4, %v2419_v27  ;;  %v610_v4 = vrot.slane %v2410_v37, %v2419_v27  ;;  %v2777_v37 = vld [vmem:[#allocation8_spill] sm:$0xff] }
 0x28a   : > { %v1587_v57 = vrot.slane %v2777_v37, %v2419_v27 }
 0x28b   : > { %1061 = vrot.lane.b32.xlu1 %v1059_v61, %s2024_s25  ;;  %v580_v61 = vld [vmem:[#allocation2 + $0x2] sm:$0x3f] }
 0x28c   : > { %v612_v21 = vmul.f32 %v610_v4, %v580_v61 }
 0x28d   : > { %1100 = vrot.lane.b32.xlu0 %v1098_v8, %s2031_s12  ;;  %v571_v8 = vmul.f32 %v569_v31, %v2563_v41 }
 0x28f   : > { %1350 = vrot.lane.b32.xlu1 %v1348_v39, %s2027_s30 }
 0x291   : > { %1389 = vrot.lane.b32.xlu0 %v1387_v42, %s2024_s25  ;;  %v1423_v42 = vrot.slane %v2776_v17, %v2419_v27  ;;  %v817_v17 = vrot.slane %v816_v12, 6 }
 0x293   : > { %935 = vrot.lane.b32.xlu1 %v933_v56, %s2031_s12  ;;  %v1425_v39 = vmul.f32 %v1423_v42, %v2505_v54  ;;  %v1589_v56 = vmul.f32 %v1587_v57, %v2521_v45  ;;  %v819_v57 = vsel %vm818_vm8, %v817_v17, %v816_v12 }
 0x295   : > { %1263 = vrot.lane.b32.xlu0 %v1261_v14, %s2031_s12  ;;  %v1606_v14 = vrot.slane %v2778_v20, %v2419_v27 }
 0x297   : > { %1225 = vrot.lane.b32.xlu1 %v1223_v62, %s2024_s25  ;;  %v1608_v54 = vmul.f32 %v1606_v14, %v2521_v45  ;;  %v590_v62 = vrot.slane %v2414_v3, %v2419_v27  ;;  %v632_v45 = vmul.f32 %v630_v34, %v580_v61 }
 0x299   : > { %1553 = vrot.lane.b32.xlu0 %v1551_v10, %s2024_s25  ;;  %v551_v10 = vmul.f32 %v549_v19, %v2563_v41  ;;  %v592_v23 = vmul.f32 %v590_v62, %v580_v61 }
 0x29b   : > { %1514 = vrot.lane.b32.xlu1 %v1512_v25, %s2027_s30  ;;  %v2617_v25 = vpop.permute.xlu1 %1144 }
 0x29d   : > { %1282 = vrot.lane.b32.xlu0 %v1280_v5, %s2030_s11  ;;  %v2615_v5 = vpop.permute.xlu0 %979 }
 0x29f   : > { %954 = vrot.lane.b32.xlu1 %v952_v46, %s2030_s11  ;;  %v2621_v36 = vpop.permute.xlu1 %1307 }
 0x2a1   : > { %1572 = vrot.lane.b32.xlu0 %v1570_v11, %s2029_s10  ;;  %v2619_v55 = vpop.permute.xlu0 %1471 }
 0x2a3   : > { %1244 = vrot.lane.b32.xlu1 %v1242_v9, %s2029_s10 }
 0x2a5   : > { %1446 = vrot.lane.b32.xlu0 %v1444_v50, %s2030_s11 }
 0x2a7   : > { %1533 = vrot.lane.b32.xlu1 %v1531_v51, %s2028_s7 }
 0x2a9   : > { %1635 = vrot.lane.b32.xlu0 %v1634_v22, %s2032_s15 }
 0x2ab   : > { %1119 = vrot.lane.b32.xlu1 %v1117_v15, %s2030_s11 }
 0x2ad   : > { %533 = vrot.lane.b32.xlu0 %v531_v6, %s2027_s30 }
 0x2af   : > { %1408 = vrot.lane.b32.xlu1 %v1406_v35, %s2029_s10 }
 0x2b1   : > { %573 = vrot.lane.b32.xlu0 %v571_v8, %s2024_s25  ;;  %s1655_s25 = sld [smem:[#allocation3]] }
 0x2b3   : > { %1427 = vrot.lane.b32.xlu1 %v1425_v39, %s2031_s12 }
 0x2b5   : > { %614 = vrot.lane.b32.xlu0 %v612_v21, %s2031_s12 }
 0x2b7   : > { %1591 = vrot.lane.b32.xlu1 %v1589_v56, %s2031_s12 }
 0x2b9   : > { %659 = vrot.lane.b32.xlu0 %v658_v43, %s2033_s18 }
 0x2bb   : > { %1610 = vrot.lane.b32.xlu1 %v1608_v54, %s2030_s11 }
 0x2bf   : > { %509 = vperm.xlu1 %1940, %v2780_v48  }
 0x2c3   : > { %553 = vrot.lane.b32.xlu1 %v551_v10, %s2028_s7 }
 0x2c7   : > { %594 = vrot.lane.b32.xlu1 %v592_v23, %s2029_s10 }
 0x2cb   : > { %634 = vrot.lane.b32.xlu1 %v632_v45, %s2030_s11 }
 0x2dd   : > { %v695_v47 = vpop.permute.xlu1 %694 }
 0x2de   : > { %v696_v9 = vrot.slane %v695_v47, 2 }
 0x2df   : > { %v2623_v3 = vpop.permute.xlu0 %1022 }
 0x2e0   : > { %v697_v40 = vsel %vm536_vm2, %v695_v47, %v696_v9  ;;  %v1024_v47 = vrot.slane %v2623_v3, 2 }
 0x2e1   : > { %v714_v11 = vpop.permute.xlu1 %713  ;;  %v699_v6 = vadd.f32 %v697_v40, %v2426_v33 }
 0x2e2   : > { %v715_v22 = vrot.slane %v714_v11, 2 }
 0x2e3   : > { %v897_v38 = vpop.permute.xlu0 %896 }
 0x2e4   : > { %v716_v1 = vsel %vm556_vm3, %v714_v11, %v715_v22  ;;  %v898_v23 = vrot.slane %v897_v38, 2 }
 0x2e5   : > { %v859_v46 = vpop.permute.xlu1 %858  ;;  %v718_v59 = vadd.f32 %v716_v1, %v699_v6 }
 0x2e6   : > { %v860_v20 = vrot.slane %v859_v46, 2 }
 0x2e7   : > { %v2625_v29 = vpop.permute.xlu0 %1186 }
 0x2e8   : > { %v861_v19 = vsel %vm536_vm2, %v859_v46, %v860_v20  ;;  %v1188_v11 = vrot.slane %v2625_v29, 2 }
 0x2e9   : > { %v733_v58 = vpop.permute.xlu1 %732  ;;  %v863_v62 = vadd.f32 %v861_v19, %v2430_v52  ;;  %v1025_v52 = vsel %vm536_vm2, %v2623_v3, %v1024_v47 }
 0x2ea   : > { %v734_v28 = vrot.slane %v733_v58, 2  ;;  %v1189_v40 = vsel %vm536_vm2, %v2625_v29, %v1188_v11 }
 0x2eb   : > { %v2627_v24 = vpop.permute.xlu0 %916 }
 0x2ec   : > { %v735_v53 = vsel %vm576_vm4, %v733_v58, %v734_v28  ;;  %v899_v58 = vsel %vm576_vm4, %v897_v38, %v898_v23  ;;  %v918_v9 = vrot.slane %v2627_v24, 6 }
 0x2ed   : > { %v878_v50 = vpop.permute.xlu1 %877  ;;  %v737_v8 = vadd.f32 %v735_v53, %v718_v59  ;;  %v981_v53 = vrot.slane %v2615_v5, 6 }
 0x2ee   : > { %v879_v54 = vrot.slane %v878_v50, 2  ;;  %v919_v38 = vsel %vm597_vm5, %v918_v9, %v2627_v24 }
 0x2ef   : > { %v2629_v49 = vpop.permute.xlu0 %1205 }
 0x2f0   : > { %v880_v10 = vsel %vm556_vm3, %v878_v50, %v879_v54  ;;  %v1207_v50 = vrot.slane %v2629_v49, 2 }
 0x2f1   : > { %v753_v51 = vpop.permute.xlu1 %752  ;;  %v882_v34 = vadd.f32 %v880_v10, %v863_v62  ;;  %v1309_v10 = vrot.slane %v2621_v36, 6 }
 0x2f2   : > { %v754_v18 = vrot.slane %v753_v51, 6  ;;  %v1208_v3 = vsel %vm556_vm3, %v2629_v49, %v1207_v50  ;;  %v1146_v50 = vrot.slane %v2617_v25, 6 }
 0x2f3   : > { %v791_v16 = vpop.permute.xlu0 %790 }
 0x2f4   : > { %v755_v44 = vsel %vm597_vm5, %v754_v18, %v753_v51  ;;  %v792_v61 = vrot.slane %v791_v16, 6 }
 0x2f5   : > { %v1042_v15 = vpop.permute.xlu1 %1041  ;;  %v757_v32 = vadd.f32 %v755_v44, %v737_v8 }
 0x2f6   : > { %v793_v43 = vsel %vm637_vm7, %v792_v61, %v791_v16  ;;  %v901_v16 = vadd.f32 %v899_v58, %v882_v34  ;;  %v1043_v51 = vrot.slane %v1042_v15, 2  ;;  %v1191_v61 = vadd.f32 %v1189_v40, %v2438_v0 }
 0x2f7   : > { %v2633_v31 = vpop.permute.xlu0 %1081 }
 0x2f8   : > { %v921_v59 = vadd.f32 %v919_v38, %v901_v16  ;;  %v1044_v8 = vsel %vm556_vm3, %v1042_v15, %v1043_v51  ;;  %v1083_v15 = vrot.slane %v2633_v31, 6 }
 0x2f9   : > { %v772_v4 = vpop.permute.xlu1 %771 }
 0x2fa   : > { %v773_v35 = vrot.slane %v772_v4, 6  ;;  %v1084_v23 = vsel %vm597_vm5, %v1083_v15, %v2633_v31 }
 0x2fb   : > { %v2638_v7 = vpop.permute.xlu0 %1369 }
 0x2fc   : > { %v774_v42 = vsel %vm617_vm6, %v773_v35, %v772_v4  ;;  %v1027_v4 = vadd.f32 %v1025_v52, %v2432_v26  ;;  %v1371_v9 = vrot.slane %v2638_v7, 2 }
 0x2fd   : > { %v776_v33 = vadd.f32 %v774_v42, %v757_v32  ;;  %v1062_v21 = vpop.permute.xlu1 %1061  ;;  %v983_v42 = vsel %vm982_vm9, %v981_v53, %v2615_v5 }
 0x2fe   : > { %v1063_v1 = vrot.slane %v1062_v21, 6  ;;  %v1372_v53 = vsel %vm556_vm3, %v2638_v7, %v1371_v9 }
 0x2ff   : > { %v2641_v39 = vpop.permute.xlu0 %1100  ;;  %v795_v37 = vadd.f32 %v793_v43, %v776_v33  ;;  %v1210_v33 = vadd.f32 %v1208_v3, %v1191_v61  ;;  %v1046_v43 = vadd.f32 %v1044_v8, %v1027_v4 }
 0x300   : > { %v1064_v35 = vsel %vm576_vm4, %v1063_v1, %v1062_v21  ;;  %v1102_v34 = vrot.slane %v2641_v39, 6 }
 0x301   : > { %v821_v14 = vmul.f32 %v819_v57, %v795_v37  ;;  %v2644_v56 = vpop.permute.xlu1 %1350 }
 0x302   : > { %v1352_v26 = vrot.slane %v2644_v56, 2 }
 0x303   : > { %v2646_v30 = vpop.permute.xlu0 %1389  ;;  %823 = vrot.lane.b32.xlu1 %v821_v14, %s2034_s19  ;;  %v1066_v14 = vadd.f32 %v1064_v35, %v1046_v43 }
 0x305   : > { %v936_v48 = vpop.permute.xlu1 %935  ;;  %v1086_v11 = vadd.f32 %v1084_v23, %v1066_v14 }
 0x306   : > { %v937_v22 = vrot.slane %v936_v48, 6 }
 0x307   : > { %v1264_v45 = vpop.permute.xlu0 %1263 }
 0x308   : > { %v938_v18 = vsel %vm617_vm6, %v937_v22, %v936_v48  ;;  %v1265_v20 = vrot.slane %v1264_v45, 6 }
 0x309   : > { %v1226_v12 = vpop.permute.xlu1 %1225  ;;  %v940_v24 = vadd.f32 %v938_v18, %v921_v59  ;;  %v1391_v59 = vrot.slane %v2646_v30, 6 }
 0x30a   : > { %v1227_v6 = vrot.slane %v1226_v12, 6  ;;  %v1266_v47 = vsel %vm617_vm6, %v1265_v20, %v1264_v45  ;;  %v1103_v45 = vsel %vm617_vm6, %v1102_v34, %v2641_v39  ;;  %v1147_v39 = vsel %vm576_vm4, %v1146_v50, %v2617_v25 }
 0x30b   : > { %v2662_v28 = vpop.permute.xlu0 %1553  ;;  %v1105_v18 = vadd.f32 %v1103_v45, %v1086_v11 }
 0x30c   : > { %v1228_v32 = vsel %vm576_vm4, %v1227_v6, %v1226_v12  ;;  %v1353_v12 = vsel %vm536_vm2, %v2644_v56, %v1352_v26  ;;  %v1311_v56 = vsel %vm1310_vm10, %v1309_v10, %v2621_v36  ;;  %v1555_v35 = vrot.slane %v2662_v28, 6 }
 0x30d   : > { %v2655_v46 = vpop.permute.xlu1 %1514  ;;  %v1230_v54 = vadd.f32 %v1228_v32, %v1210_v33  ;;  %v1355_v31 = vadd.f32 %v1353_v12, %v2449_v2 }
 0x30e   : > { %v1516_v22 = vrot.slane %v2655_v46, 2 }
 0x30f   : > { %v1283_v37 = vpop.permute.xlu0 %1282  ;;  %v1374_v3 = vadd.f32 %v1372_v53, %v1355_v31 }
 0x310   : > { %v1284_v19 = vrot.slane %v1283_v37, 6  ;;  %v1517_v2 = vsel %vm536_vm2, %v2655_v46, %v1516_v22  ;;  %v1392_v46 = vsel %vm576_vm4, %v1391_v59, %v2646_v30 }
 0x311   : > { %v955_v44 = vpop.permute.xlu1 %954  ;;  %v1519_v7 = vadd.f32 %v1517_v2, %v2441_v13  ;;  %v1556_v13 = vsel %vm576_vm4, %v1555_v35, %v2662_v28 }
 0x312   : > { %v956_v29 = vrot.slane %v955_v44, 6  ;;  %v1285_v16 = vsel %vm637_vm7, %v1284_v19, %v1283_v37 }
 0x313   : > { %v1573_v51 = vpop.permute.xlu0 %1572 }
 0x314   : > { %v957_v17 = vsel %vm637_vm7, %v956_v29, %v955_v44 }
 0x315   : > { %v959_v49 = vadd.f32 %v957_v17, %v940_v24  ;;  %v1245_v57 = vpop.permute.xlu1 %1244  ;;  %v1394_v17 = vadd.f32 %v1392_v46, %v1374_v3 }
 0x316   : > { %v1246_v0 = vrot.slane %v1245_v57, 6 }
 0x317   : > { %v985_v21 = vmul.f32 %v983_v42, %v959_v49  ;;  %v1447_v61 = vpop.permute.xlu0 %1446  ;;  %v1473_v49 = vrot.slane %v2619_v55, 6 }
 0x318   : > { %v1247_v48 = vsel %vm597_vm5, %v1246_v0, %v1245_v57  ;;  %v1448_v25 = vrot.slane %v1447_v61, 6  ;;  %v1574_v57 = vrot.slane %v1573_v51, 6 }
 0x319   : > { %v1249_v5 = vadd.f32 %v1247_v48, %v1230_v54  ;;  %v1534_v62 = vpop.permute.xlu1 %1533  ;;  %987 = vrot.lane.b32.xlu0 %v985_v21, %s2035_s20  ;;  %v1475_v21 = vsel %vm1474_vm11, %v1473_v49, %v2619_v55 }
 0x31a   : > { %v1535_v38 = vrot.slane %v1534_v62, 2  ;;  %v1449_v0 = vsel %vm637_vm7, %v1448_v25, %v1447_v61  ;;  %v1575_v19 = vsel %vm597_vm5, %v1574_v57, %v1573_v51 }
 0x31b   : > { %v1268_v58 = vadd.f32 %v1266_v47, %v1249_v5  ;;  %v1636_v10 = vpop.permute.xlu0 %1635 }
 0x31c   : > { %v1536_v29 = vsel %vm556_vm3, %v1534_v62, %v1535_v38  ;;  %v1637_v23 = vrot.slane %v1636_v10, 6 }
 0x31d   : > { %v1120_v52 = vpop.permute.xlu1 %1119  ;;  %v1287_v40 = vadd.f32 %v1285_v16, %v1268_v58  ;;  %v1538_v42 = vadd.f32 %v1536_v29, %v1519_v7 }
 0x31e   : > { %v1121_v1 = vrot.slane %v1120_v52, 6  ;;  %v1639_v58 = vsel %vm1638_vm12, %v1637_v23, %v1636_v10 }
 0x31f   : > { %v1313_v6 = vmul.f32 %v1311_v56, %v1287_v40  ;;  %v1558_v15 = vadd.f32 %v1556_v13, %v1538_v42  ;;  %v534_v55 = vpop.permute.xlu0 %533 }
 0x320   : > { %v1122_v44 = vsel %vm637_vm7, %v1121_v1, %v1120_v52  ;;  %v535_v22 = vrot.slane %v534_v55, 2 }
 0x321   : > { %v1124_v8 = vadd.f32 %v1122_v44, %v1105_v18  ;;  %v1409_v36 = vpop.permute.xlu1 %1408  ;;  %1315 = vrot.lane.b32.xlu0 %v1313_v6, %s2036_s21  ;;  %v1577_v28 = vadd.f32 %v1575_v19, %v1558_v15 }
 0x322   : > { %v1410_v4 = vrot.slane %v1409_v36, 6  ;;  %v537_v52 = vsel %vm536_vm2, %v534_v55, %v535_v22  ;;  %vm1482_vm2 = vcmask 1006592   ;;  %v1679_v55 = vsub.s32 2, %v2181_v60 }
 0x323   : > { %v1149_v24 = vmul.f32 %v1147_v39, %v1124_v8  ;;  %v574_v16 = vpop.permute.xlu0 %573  ;;  %v1683_v22 = vsub.s32 4, %v2181_v60 }
 0x324   : > { %v1411_v32 = vsel %vm597_vm5, %v1410_v4, %v1409_v36  ;;  %v575_v56 = vrot.slane %v574_v16, 2 }
 0x325   : > { %v1428_v33 = vpop.permute.xlu1 %1427  ;;  %1151 = vrot.lane.b32.xlu1 %v1149_v24, %s2037_s22  ;;  %v1413_v37 = vadd.f32 %v1411_v32, %v1394_v17 }
 0x326   : > { %v1429_v43 = vrot.slane %v1428_v33, 6  ;;  %v577_v59 = vsel %vm576_vm4, %v574_v16, %v575_v56  ;;  %vm1709_vm4 = vcmask 416768  }
 0x327   : > { %v615_v1 = vpop.permute.xlu0 %614 }
 0x328   : > { %v1430_v30 = vsel %vm617_vm6, %v1429_v43, %v1428_v33  ;;  %v616_v2 = vrot.slane %v615_v1, 6 }
 0x329   : > { %v1432_v26 = vadd.f32 %v1430_v30, %v1413_v37  ;;  %v1592_v20 = vpop.permute.xlu1 %1591 }
 0x32a   : > { %v1593_v14 = vrot.slane %v1592_v20, 6 }
 0x32b   : > { %v1451_v54 = vadd.f32 %v1449_v0, %v1432_v26  ;;  %v660_v4 = vpop.permute.xlu0 %659 }
 0x32c   : > { %v1594_v48 = vsel %vm617_vm6, %v1593_v14, %v1592_v20  ;;  %v661_v24 = vrot.slane %v660_v4, 6 }
 0x32d   : > { %v1477_v5 = vmul.f32 %v1475_v21, %v1451_v54  ;;  %v1611_v62 = vpop.permute.xlu1 %1610  ;;  %v1596_v12 = vadd.f32 %v1594_v48, %v1577_v28 }
 0x32e   : > { %v1612_v34 = vrot.slane %v1611_v62, 6  ;;  %v663_v42 = vsel %vm662_vm13, %v661_v24, %v660_v4 }
 0x32f   : > { %1479 = vrot.lane.b32.xlu1 %v1477_v5, %s2038_s23 }
 0x330   : > { %v1613_v47 = vsel %vm637_vm7, %v1612_v34, %v1611_v62  ;;  %v1656_v34 = vstv %s1655_s25 }
 0x331   : > { %v1615_v11 = vadd.f32 %v1613_v47, %v1596_v12 }
 0x333   : > { %v1641_v9 = vmul.f32 %v1639_v58, %v1615_v11 }
 0x335   : > { %1643 = vrot.lane.b32.xlu0 %v1641_v9, %s2039_s24 }
 0x33e   : > { %v510_v50 = vpop.permute.xlu1 %509 }
 0x33f   : > { %v517_v31 = vrot.slane %v510_v50, %v2419_v27 }
 0x341   : > { %v519_v51 = vmul.f32 %v517_v31, %v2563_v41  ;;  %v618_v41 = vsel %vm617_vm6, %v616_v2, %v615_v1  ;;  %v1666_v1 = vld [vmem:[%s2382_s9 + $0x10] sm:$0xff] }
 0x342   : > { %v554_v40 = vpop.permute.xlu1 %553 }
 0x343   : > { %v539_v45 = vadd.f32 %v537_v52, %v519_v51  ;;  %v555_v38 = vrot.slane %v554_v40, 2 }
 0x345   : > { %v557_v18 = vsel %vm556_vm3, %v554_v40, %v555_v38  ;;  %vm1646_vm3 = vcmask 998400   ;;  %v1664_v38 = vld [vmem:[%s2382_s9] sm:$0xff] }
 0x346   : > { %v559_v6 = vadd.f32 %v557_v18, %v539_v45  ;;  %v595_v53 = vpop.permute.xlu1 %594  ;;  %v1668_v18 = vld [vmem:[%s2382_s9 + $0x20] sm:$0xff] }
 0x347   : > { %v596_v44 = vrot.slane %v595_v53, 6 }
 0x348   : > { %v579_v3 = vadd.f32 %v577_v59, %v559_v6 }
 0x349   : > { %v598_v27 = vsel %vm597_vm5, %v596_v44, %v595_v53  ;;  %v2781_v44 = vld [vmem:[#allocation10_spill] sm:$0xff] }
 0x34a   : > { %v600_v8 = vadd.f32 %v598_v27, %v579_v3  ;;  %v635_v39 = vpop.permute.xlu1 %634  ;;  %v1665_v27 = vld [vmem:[%s2382_s9 + $0x8] sm:$0xff] }
 0x34b   : > { %v636_v29 = vrot.slane %v635_v39, 6 }
 0x34c   : > { %v620_v36 = vadd.f32 %v618_v41, %v600_v8  ;;  %v1667_v8 = vld [vmem:[%s2382_s9 + $0x18] sm:$0xff]  ;;  %v1669_v41 = vld [vmem:[%s2382_s9 + $0x28] sm:$0xff] }
 0x34d   : > { %v638_v61 = vsel %vm637_vm7, %v636_v29, %v635_v39 }
 0x34e   : > { %v640_v32 = vadd.f32 %v638_v61, %v620_v36 }
 0x350   : > { %v665_v37 = vmul.f32 %v663_v42, %v640_v32 }
 0x375   : > { %v824_v7 = vpop.permute.xlu1 %823 }
 0x376   : > { %v825_v35 = vrot.slane %v824_v7, 2 }
 0x378   : > { %v827_v25 = vsel %vm826_vm14, %v824_v7, %v825_v35  ;;  %v2782_v7 = vld [vmem:[#allocation11_spill] sm:$0xff] }
 0x379   : > { %v829_v13 = vadd.f32 %v827_v25, %v665_v37 }
 0x38b   : > { %v988_v46 = vpop.permute.xlu0 %987 }
 0x38c   : > { %v989_v33 = vrot.slane %v988_v46, 2 }
 0x38e   : > { %v991_v49 = vsel %vm990_vm15, %v988_v46, %v989_v33 }
 0x38f   : > { %v993_v15 = vadd.f32 %v991_v49, %v829_v13 }
 0x393   : > { %v1316_v57 = vpop.permute.xlu0 %1315 }
 0x394   : > { %v1317_v20 = vrot.slane %v1316_v57, 2 }
 0x396   : > { %v1319_v54 = vsel %vm1318_vm1, %v1316_v57, %v1317_v20 }
 0x397   : > { %v1152_v17 = vpop.permute.xlu1 %1151 }
 0x398   : > { %v1153_v43 = vrot.slane %v1152_v17, 2 }
 0x39a   : > { %v1155_v30 = vsel %vm1154_vm0, %v1152_v17, %v1153_v43 }
 0x39b   : > { %v1157_v14 = vadd.f32 %v1155_v30, %v993_v15 }
 0x39d   : > { %v1321_v19 = vadd.f32 %v1319_v54, %v1157_v14 }
 0x3a1   : > { %v1480_v26 = vpop.permute.xlu1 %1479 }
 0x3a2   : > { %v1481_v0 = vrot.slane %v1480_v26, 2 }
 0x3a4   : > { %v1483_v21 = vsel %vm1482_vm2, %v1480_v26, %v1481_v0 }
 0x3a5   : > { %v1485_v5 = vadd.f32 %v1483_v21, %v1321_v19 }
 0x3a7   : > { %v1644_v48 = vpop.permute.xlu0 %1643 }
 0x3a8   : > { %v1645_v10 = vrot.slane %v1644_v48, 2 }
 0x3aa   : > { %v1647_v28 = vsel %vm1646_vm3, %v1644_v48, %v1645_v10 }
 0x3ab   : > { %v1649_v62 = vadd.f32 %v1647_v28, %v1485_v5 }
 0x3ad   : > { %v1805_v23 = vrot.slane %v1649_v62, 9 }
 0x3af   : > { %v1654_v12 = vadd.f32 %v1805_v23, %v1649_v62 }
 0x3b1   : > { %v1657_v47 = vadd.f32 %v1656_v34, %v1654_v12 }
 0x3b3   : > { %v1806_v11 = vmul.f32 -1.442695, %v1657_v47 }
 0x3b5   : > { %1958 = vpow2.f32 %v1806_v11 }
 0x3bf   : > { %v1959_v58 = vpop.eup %1958 }
 0x3c0   : > { %v1661_v9 = vadd.f32 1.0, %v1959_v58 }
 0x3c2   : > { %1960 = vrcp.f32 %v1661_v9 }
 0x3cc   : > { %v1961_v16 = vpop.eup %1960 }
 0x3cd   : > { %v1680_v50 = vrot.slane %v1961_v16, %v1679_v55  ;;  %v1676_v31 = vrot.slane %v1961_v16, %v2184_v63  ;;  %v1684_v40 = vrot.slane %v1961_v16, %v1683_v22 }
 0x3cf   : > { %v1695_v51 = vrot.slane %v1680_v50, %v2184_v63  ;;  %v1691_v52 = vrot.slane %v1676_v31, %v2184_v63  ;;  %v1699_v56 = vrot.slane %v1684_v40, %v2184_v63 }
 0x3d1   : > { %1705 = vrot.lane.b32.xlu0 %v1695_v51, %s2040_s26  ;;  %1703 = vrot.lane.b32.xlu1 %v1691_v52, %s2040_s26 }
 0x3d5   : > { %1707 = vrot.lane.b32.xlu1 %v1699_v56, %s2040_s26 }
 0x443   : > { %v1706_v60 = vpop.permute.xlu0 %1705  ;;  %v1704_v45 = vpop.permute.xlu1 %1703 }
 0x444   : > { %v1710_v6 = vsel %vm1709_vm4, %v1704_v45, %v1706_v60 }
 0x445   : > { %v1714_v53 = vmul.f32 %v1710_v6, %v1664_v38  ;;  %v1716_v59 = vmul.f32 %v1710_v6, %v1666_v1  ;;  %v1718_v2 = vmul.f32 %v1710_v6, %v1668_v18  ;;  %v1720_v63 = vmul.f32 %v1710_v6, %v2781_v44 }
 0x447   : > { %1722 = vst [vmem:[%s2382_s9] sm:$0xff] %v1714_v53  ;;  %1724 = vst [vmem:[%s2382_s9 + $0x10] sm:$0xff] %v1716_v59  ;;  %v1708_v3 = vpop.permute.xlu1 %1707 }
 0x448   : > { %1726 = vst [vmem:[%s2382_s9 + $0x20] sm:$0xff] %v1718_v2  ;;  %1728 = vst [vmem:[%s2382_s9 + $0x30] sm:$0xff] %v1720_v63  ;;  %v1711_v36 = vsel %vm1709_vm4, %v1706_v60, %v1708_v3 }
 0x449   : > { %v1715_v39 = vmul.f32 %v1711_v36, %v1665_v27  ;;  %v1717_v29 = vmul.f32 %v1711_v36, %v1667_v8  ;;  %v1719_v4 = vmul.f32 %v1711_v36, %v1669_v41  ;;  %v1721_v61 = vmul.f32 %v1711_v36, %v2782_v7 }
 0x44b   : > { %1723 = vst [vmem:[%s2382_s9 + $0x8] sm:$0xff] %v1715_v39  ;;  %1725 = vst [vmem:[%s2382_s9 + $0x18] sm:$0xff] %v1717_v29 }
 0x44c   : > { %1727 = vst [vmem:[%s2382_s9 + $0x28] sm:$0xff] %v1719_v4  ;;  %1729 = vst [vmem:[%s2382_s9 + $0x38] sm:$0xff] %v1721_v61 }
 0x44d PF: > { %s19_s29 = sadd.s32 1, %s1968_s29  }
 0x44e   : > { %p16_p4 = scmp.ge.s32.totalorder %s19_s29, 4  }
 0x450   :  { %18 = sbr.rel (!%p16_p4) target bundleno = 2 (0x2), region = 88 }

</bundles_post_ra>
